<compile_context>
chip_gen: v5e
topology: v5e:2x2
jax: 0.10.0
libtpu: 0.0.40
codegen_flags: <defaults>
</compile_context>

<pallas_src>
import functools

import jax
import jax.numpy as jnp
from jax.experimental import pallas as pl
from jax.experimental.pallas import tpu as pltpu


# ----------------------------------------------------------------------------
# Kernel
# ----------------------------------------------------------------------------
def _fused_kernel(pcs_ref,                       # (TM, 3)   bf16
                  we_ref, be_ref,                # (3, F) bf16, (1, F) f32
                  w1f_ref, w1p_ref, b1_ref,      # (F, H) bf16, (3, H) bf16, (1, H) f32
                  w2_ref, b2_ref,                # (H, 4) bf16, (1, 4) f32
                  out_ref):                      # (TM, 4)   f32  [actor(3), score(1)]
    pcs = pcs_ref[...]                                        # bf16 (TM, 3)

    # --- stand-in encoder: feat = tanh(pcs @ We + be) --------------------- #
    feat = jnp.tanh(
        jnp.dot(pcs, we_ref[...], preferred_element_type=jnp.float32)
        + be_ref[...])                                        # f32 (TM, F)

    # --- fused first layers of both heads (concat folded into split W1) --- #
    # h = relu([feat, pcs] @ [Wa1 | Ws1] + [ba1 | bs1])
    h = jnp.dot(feat.astype(w1f_ref.dtype), w1f_ref[...],
                preferred_element_type=jnp.float32)
    h = h + jnp.dot(pcs, w1p_ref[...], preferred_element_type=jnp.float32)
    h = jnp.maximum(h + b1_ref[...], 0.0)                     # f32 (TM, H)

    # --- fused second layers (block-diagonal W2) -> (TM, 4) --------------- #
    y = jnp.dot(h.astype(w2_ref.dtype), w2_ref[...],
                preferred_element_type=jnp.float32) + b2_ref[...]

    # --- f32 epilogue: F.normalize on cols 0..2, sigmoid on col 3 --------- #
    col = jax.lax.broadcasted_iota(jnp.int32, y.shape, 1)
    is_actor = col < 3
    sumsq = jnp.sum(jnp.where(is_actor, y * y, 0.0), axis=-1, keepdims=True)
    # torch F.normalize: x / max(||x||, 1e-12)  ==  x * rsqrt(max(sumsq, 1e-24))
    inv_norm = jax.lax.rsqrt(jnp.maximum(sumsq, 1e-24))
    out = jnp.where(is_actor, y * inv_norm, jax.nn.sigmoid(y))
    out_ref[...] = out.astype(out_ref.dtype)


# ----------------------------------------------------------------------------
# Wrapper
# ----------------------------------------------------------------------------
def _choose_tile(M, requested=512):
    """Largest sublane-friendly row tile, but keep grid length >= 2 (v7x)."""
    t = min(requested, M)
    if M >= 32:
        t = min(t, max(16, ((M // 2) // 16) * 16))   # grid >= 2 when possible
        t = max(16, (t // 16) * 16)                  # bf16 sublane packing = 16
    return t


def _pack_params(params, compute_dtype=jnp.bfloat16):
    """Pack per-head weights into the fused layout used by the kernel."""
    F = params["we"].shape[1]
    H_a = params["wa1"].shape[1]
    H_s = params["ws1"].shape[1]

    w1 = jnp.concatenate([params["wa1"], params["ws1"]], axis=1)      # (F+3, Ha+Hs)
    b1 = jnp.concatenate([params["ba1"], params["bs1"]], axis=1)      # (1, Ha+Hs)

    w2 = jnp.zeros((H_a + H_s, 4), jnp.float32)
    w2 = w2.at[:H_a, :3].set(params["wa2"])
    w2 = w2.at[H_a:, 3:].set(params["ws2"])                            # block-diag
    b2 = jnp.concatenate([params["ba2"], params["bs2"]], axis=1)      # (1, 4)

    return dict(
        we=params["we"].astype(compute_dtype),
        be=params["be"].astype(jnp.float32),
        w1f=w1[:F].astype(compute_dtype),
        w1p=w1[F:].astype(compute_dtype),
        b1=b1.astype(jnp.float32),
        w2=w2.astype(compute_dtype),
        b2=b2.astype(jnp.float32),
    )


def fused_heads_pallas(pcs_flat, packed, *, tile_m):
    """pcs_flat: (M, 3) bf16, M % tile_m == 0.  Returns (M, 4) f32."""
    M, _ = pcs_flat.shape
    assert M % tile_m == 0

    def full(a):
        return pl.BlockSpec(a.shape, lambda i: (0,) * a.ndim)

    grid_spec = pltpu.PrefetchScalarGridSpec(
        num_scalar_prefetch=0,
        grid=(M // tile_m,),
        in_specs=[
            pl.BlockSpec((tile_m, 3), lambda i: (i, 0)),   # pcs rows
            full(packed["we"]), full(packed["be"]),        # encoder (resident)
            full(packed["w1f"]), full(packed["w1p"]), full(packed["b1"]),
            full(packed["w2"]), full(packed["b2"]),
        ],
        out_specs=pl.BlockSpec((tile_m, 4), lambda i: (i, 0)),
    )

    return pl.pallas_call(
        _fused_kernel,
        out_shape=jax.ShapeDtypeStruct((M, 4), jnp.float32),
        grid_spec=grid_spec,
        compiler_params=pltpu.CompilerParams(
            dimension_semantics=("parallel",)),
    )(pcs_flat,
      packed["we"], packed["be"],
      packed["w1f"], packed["w1p"], packed["b1"],
      packed["w2"], packed["b2"])


def init_params(key, feat_dim=32, mlp_dim_actor=64, mlp_dim_score=64):
    """Deterministic parameter init matching the nn.Linear shapes of the module."""
    d_in = feat_dim + 3
    ks = jax.random.split(key, 10)

    def lin(kw, kb, fan_in, fan_out):
        bound = 1.0 / jnp.sqrt(fan_in)
        w = jax.random.uniform(kw, (fan_in, fan_out), jnp.float32, -bound, bound)
        b = jax.random.uniform(kb, (1, fan_out), jnp.float32, -bound, bound)
        return w, b

    wa1, ba1 = lin(ks[0], ks[1], d_in, mlp_dim_actor)
    wa2, ba2 = lin(ks[2], ks[3], mlp_dim_actor, 3)
    ws1, bs1 = lin(ks[4], ks[5], d_in, mlp_dim_score)
    ws2, bs2 = lin(ks[6], ks[7], mlp_dim_score, 1)
    # stand-in "pointNeXt" encoder: per-point linear 3 -> feat_dim
    we, be = lin(ks[8], ks[9], 3, feat_dim)
    return dict(wa1=wa1, ba1=ba1, wa2=wa2, ba2=ba2,
                ws1=ws1, bs1=bs1, ws2=ws2, bs2=bs2,
                we=we, be=be)


@functools.partial(jax.jit, static_argnames=("tile_m",))
def network_forward(pcs, pcs_dir, params, *, tile_m=512):
    """Mirrors Network.forward(pcs, pcs_dir) -> (pred_actor, pred_score).

    pcs     : (B, N, 3)  float32
    pcs_dir : (B, N, 3)  float32  (unused by the original forward body)
    returns : pred_actor (B, N, 3), pred_score (B, N, 1)
    """
    del pcs_dir  # unused in the reference forward()
    B, N, _ = pcs.shape
    M = B * N

    packed = _pack_params(params, compute_dtype=jnp.bfloat16)

    tile = _choose_tile(M, tile_m)
    num_tiles = -(-M // tile)
    M_pad = num_tiles * tile

    pcs_flat = pcs.reshape(M, 3).astype(jnp.bfloat16)
    if M_pad != M:
        pcs_flat = jnp.pad(pcs_flat, ((0, M_pad - M), (0, 0)))

    out = fused_heads_pallas(pcs_flat, packed, tile_m=tile)   # (M_pad, 4) f32
    out = out[:M]
    pred_actor = out[:, :3].reshape(B, N, 3)
    pred_score = out[:, 3:4].reshape(B, N, 1)
    return pred_actor, pred_score


if __name__ == "__main__":
    key = jax.random.PRNGKey(0)
    k_pcs, k_dir, k_param = jax.random.split(key, 3)

    B, N, FEAT = 2, 128, 32
    pcs = jax.random.normal(k_pcs, (B, N, 3), jnp.float32)
    pcs_dir = jax.random.normal(k_dir, (B, N, 3), jnp.float32)
    params = init_params(k_param, feat_dim=FEAT, mlp_dim_actor=64, mlp_dim_score=64)

    pred_actor, pred_score = network_forward(pcs, pcs_dir, params)
    jax.block_until_ready((pred_actor, pred_score))

    assert pred_actor.shape == (B, N, 3)
    assert pred_score.shape == (B, N, 1)
    # sanity: actor rows are unit-norm, scores are in (0, 1)
    norms = jnp.linalg.norm(pred_actor, axis=-1)
    assert bool(jnp.all(jnp.abs(norms - 1.0) < 1e-4))
    assert bool(jnp.all((pred_score > 0.0) & (pred_score < 1.0)))

    print("KERNEL_OK")
</pallas_src>

<mosaic_0001>
module attributes {stable_mosaic.version = 11 : i64} {
  func.func @_fused_kernel(%arg0: i32, %arg1: memref<128x3xbf16, #tpu.memory_space<vmem>>, %arg2: memref<3x32xbf16, #tpu.memory_space<vmem>>, %arg3: memref<1x32xf32, #tpu.memory_space<vmem>>, %arg4: memref<32x128xbf16, #tpu.memory_space<vmem>>, %arg5: memref<3x128xbf16, #tpu.memory_space<vmem>>, %arg6: memref<1x128xf32, #tpu.memory_space<vmem>>, %arg7: memref<128x4xbf16, #tpu.memory_space<vmem>>, %arg8: memref<1x4xf32, #tpu.memory_space<vmem>>, %arg9: memref<128x4xf32, #tpu.memory_space<vmem>>) attributes {dimension_semantics = [#tpu.dimension_semantics<parallel>], iteration_bounds = array<i64: 2>, scalar_prefetch = 0 : i64, scratch_operands = 0 : i64, tpu.core_type = #tpu.core_type<tc>, window_params = [{transform_indices = @transform_0, window_bounds = array<i64: 128, 3>}, {pipeline_mode = #tpu.pipeline_mode<synchronous>, transform_indices = @transform_1, window_bounds = array<i64: 3, 32>}, {pipeline_mode = #tpu.pipeline_mode<synchronous>, transform_indices = @transform_2, window_bounds = array<i64: 1, 32>}, {pipeline_mode = #tpu.pipeline_mode<synchronous>, transform_indices = @transform_3, window_bounds = array<i64: 32, 128>}, {pipeline_mode = #tpu.pipeline_mode<synchronous>, transform_indices = @transform_4, window_bounds = array<i64: 3, 128>}, {pipeline_mode = #tpu.pipeline_mode<synchronous>, transform_indices = @transform_5, window_bounds = array<i64: 1, 128>}, {pipeline_mode = #tpu.pipeline_mode<synchronous>, transform_indices = @transform_6, window_bounds = array<i64: 128, 4>}, {pipeline_mode = #tpu.pipeline_mode<synchronous>, transform_indices = @transform_7, window_bounds = array<i64: 1, 4>}, {transform_indices = @transform_8, window_bounds = array<i64: 128, 4>}]} {
    %c0 = arith.constant 0 : index
    %c0_0 = arith.constant 0 : index
    %0 = vector.load %arg1[%c0, %c0_0] : memref<128x3xbf16, #tpu.memory_space<vmem>>, vector<128x3xbf16>
    %c0_1 = arith.constant 0 : index
    %c0_2 = arith.constant 0 : index
    %1 = vector.load %arg2[%c0_1, %c0_2] : memref<3x32xbf16, #tpu.memory_space<vmem>>, vector<3x32xbf16>
    %cst = arith.constant dense<0.000000e+00> : vector<128x32xf32>
    %2 = tpu.matmul %0, %1, %cst {dimension_numbers = #tpu.dot_dimension_numbers<[1], [0], [0], [1], [0, 0, 1, 1], [], []>} : vector<128x3xbf16>, vector<3x32xbf16>, vector<128x32xf32> -> vector<128x32xf32>
    %c0_3 = arith.constant 0 : index
    %c0_4 = arith.constant 0 : index
    %3 = vector.load %arg3[%c0_3, %c0_4] : memref<1x32xf32, #tpu.memory_space<vmem>>, vector<1x32xf32>
    %4 = vector.broadcast %3 : vector<1x32xf32> to vector<128x32xf32>
    %5 = arith.addf %2, %4 : vector<128x32xf32>
    %6 = math.tanh %5 : vector<128x32xf32>
    %7 = arith.truncf %6 : vector<128x32xf32> to vector<128x32xbf16>
    %c0_5 = arith.constant 0 : index
    %c0_6 = arith.constant 0 : index
    %8 = vector.load %arg4[%c0_5, %c0_6] : memref<32x128xbf16, #tpu.memory_space<vmem>>, vector<32x128xbf16>
    %cst_7 = arith.constant dense<0.000000e+00> : vector<128x128xf32>
    %9 = tpu.matmul %7, %8, %cst_7 {dimension_numbers = #tpu.dot_dimension_numbers<[1], [0], [0], [1], [0, 0, 1, 1], [], []>} : vector<128x32xbf16>, vector<32x128xbf16>, vector<128x128xf32> -> vector<128x128xf32>
    %c0_8 = arith.constant 0 : index
    %c0_9 = arith.constant 0 : index
    %10 = vector.load %arg5[%c0_8, %c0_9] : memref<3x128xbf16, #tpu.memory_space<vmem>>, vector<3x128xbf16>
    %cst_10 = arith.constant dense<0.000000e+00> : vector<128x128xf32>
    %11 = tpu.matmul %0, %10, %cst_10 {dimension_numbers = #tpu.dot_dimension_numbers<[1], [0], [0], [1], [0, 0, 1, 1], [], []>} : vector<128x3xbf16>, vector<3x128xbf16>, vector<128x128xf32> -> vector<128x128xf32>
    %12 = arith.addf %9, %11 : vector<128x128xf32>
    %c0_11 = arith.constant 0 : index
    %c0_12 = arith.constant 0 : index
    %13 = vector.load %arg6[%c0_11, %c0_12] : memref<1x128xf32, #tpu.memory_space<vmem>>, vector<1x128xf32>
    %14 = vector.broadcast %13 : vector<1x128xf32> to vector<128x128xf32>
    %15 = arith.addf %12, %14 : vector<128x128xf32>
    %cst_13 = arith.constant 0.000000e+00 : f32
    %16 = vector.broadcast %cst_13 : f32 to vector<128x128xf32>
    %17 = arith.maximumf %15, %16 : vector<128x128xf32>
    %18 = arith.truncf %17 : vector<128x128xf32> to vector<128x128xbf16>
    %c0_14 = arith.constant 0 : index
    %c0_15 = arith.constant 0 : index
    %19 = vector.load %arg7[%c0_14, %c0_15] : memref<128x4xbf16, #tpu.memory_space<vmem>>, vector<128x4xbf16>
    %cst_16 = arith.constant dense<0.000000e+00> : vector<128x4xf32>
    %20 = tpu.matmul %18, %19, %cst_16 {dimension_numbers = #tpu.dot_dimension_numbers<[1], [0], [0], [1], [0, 0, 1, 1], [], []>} : vector<128x128xbf16>, vector<128x4xbf16>, vector<128x4xf32> -> vector<128x4xf32>
    %c0_17 = arith.constant 0 : index
    %c0_18 = arith.constant 0 : index
    %21 = vector.load %arg8[%c0_17, %c0_18] : memref<1x4xf32, #tpu.memory_space<vmem>>, vector<1x4xf32>
    %22 = vector.broadcast %21 : vector<1x4xf32> to vector<128x4xf32>
    %23 = arith.addf %20, %22 : vector<128x4xf32>
    %24 = tpu.iota {dimensions = array<i32: 1>} : vector<128x4xi32>
    %c3_i32 = arith.constant 3 : i32
    %25 = vector.broadcast %c3_i32 : i32 to vector<128x4xi32>
    %26 = arith.cmpi slt, %24, %25 : vector<128x4xi32>
    %27 = arith.mulf %23, %23 : vector<128x4xf32>
    %cst_19 = arith.constant 0.000000e+00 : f32
    %28 = vector.broadcast %cst_19 : f32 to vector<128x4xf32>
    %29 = arith.select %26, %27, %28 : vector<128x4xi1>, vector<128x4xf32>
    %cst_20 = arith.constant dense<0.000000e+00> : vector<128xf32>
    %30 = vector.multi_reduction <add>, %29, %cst_20 [1] : vector<128x4xf32> to vector<128xf32>
    %31 = vector.shape_cast %30 : vector<128xf32> to vector<128x1xf32>
    %cst_21 = arith.constant 1.000000e-24 : f32
    %32 = vector.broadcast %cst_21 : f32 to vector<128x1xf32>
    %33 = arith.maximumf %31, %32 : vector<128x1xf32>
    %34 = math.rsqrt %33 : vector<128x1xf32>
    %35 = vector.broadcast %34 : vector<128x1xf32> to vector<128x4xf32>
    %36 = arith.mulf %23, %35 : vector<128x4xf32>
    %37 = arith.negf %23 : vector<128x4xf32>
    %38 = math.exp %37 : vector<128x4xf32>
    %cst_22 = arith.constant 1.000000e+00 : f32
    %39 = vector.broadcast %cst_22 : f32 to vector<128x4xf32>
    %40 = arith.addf %39, %38 : vector<128x4xf32>
    %41 = arith.divf %39, %40 : vector<128x4xf32>
    %42 = arith.select %26, %36, %41 : vector<128x4xi1>, vector<128x4xf32>
    %c0_23 = arith.constant 0 : index
    %c0_24 = arith.constant 0 : index
    %43 = vector.load %arg9[%c0_23, %c0_24] : memref<128x4xf32, #tpu.memory_space<vmem>>, vector<128x4xf32>
    tpu.vector_store %arg9[%c0_23, %c0_24], %42 {strides = array<i32>} : memref<128x4xf32, #tpu.memory_space<vmem>>, vector<128x4xf32>,
    return
  }
  func.func @transform_0(%arg0: i32) -> (i32, i32) {
    %c0_i32 = arith.constant 0 : i32
    %c0_i32_0 = arith.constant 0 : i32
    return %arg0, %c0_i32 : i32, i32
  }
  func.func @transform_1(%arg0: i32) -> (i32, i32) {
    %c0_i32 = arith.constant 0 : i32
    %c0_i32_0 = arith.constant 0 : i32
    %c0_i32_1 = arith.constant 0 : i32
    return %c0_i32, %c0_i32_0 : i32, i32
  }
  func.func @transform_2(%arg0: i32) -> (i32, i32) {
    %c0_i32 = arith.constant 0 : i32
    %c0_i32_0 = arith.constant 0 : i32
    %c0_i32_1 = arith.constant 0 : i32
    return %c0_i32, %c0_i32_0 : i32, i32
  }
  func.func @transform_3(%arg0: i32) -> (i32, i32) {
    %c0_i32 = arith.constant 0 : i32
    %c0_i32_0 = arith.constant 0 : i32
    %c0_i32_1 = arith.constant 0 : i32
    return %c0_i32, %c0_i32_0 : i32, i32
  }
  func.func @transform_4(%arg0: i32) -> (i32, i32) {
    %c0_i32 = arith.constant 0 : i32
    %c0_i32_0 = arith.constant 0 : i32
    %c0_i32_1 = arith.constant 0 : i32
    return %c0_i32, %c0_i32_0 : i32, i32
  }
  func.func @transform_5(%arg0: i32) -> (i32, i32) {
    %c0_i32 = arith.constant 0 : i32
    %c0_i32_0 = arith.constant 0 : i32
    %c0_i32_1 = arith.constant 0 : i32
    return %c0_i32, %c0_i32_0 : i32, i32
  }
  func.func @transform_6(%arg0: i32) -> (i32, i32) {
    %c0_i32 = arith.constant 0 : i32
    %c0_i32_0 = arith.constant 0 : i32
    %c0_i32_1 = arith.constant 0 : i32
    return %c0_i32, %c0_i32_0 : i32, i32
  }
  func.func @transform_7(%arg0: i32) -> (i32, i32) {
    %c0_i32 = arith.constant 0 : i32
    %c0_i32_0 = arith.constant 0 : i32
    %c0_i32_1 = arith.constant 0 : i32
    return %c0_i32, %c0_i32_0 : i32, i32
  }
  func.func @transform_8(%arg0: i32) -> (i32, i32) {
    %c0_i32 = arith.constant 0 : i32
    %c0_i32_0 = arith.constant 0 : i32
    return %arg0, %c0_i32 : i32, i32
  }
}

</mosaic_0001>

<bundles_post_ra>
// kernel: network_forward.1
= control target key start
LH: loop header
LB: loop body
LE: loop exit
PB: predicated region body
PF: predicated region fallthrough
CT: control target
= control target key end

     0   :  { %s1791_s27 = smov 0   ;;  %s2537_s0 = inlined_call_operand.vmem [shape: bf16[256,3], index: 0, kind: input, shape index: {}]   ;;  %s2538_s1 = inlined_call_operand.vmem [shape: bf16[3,32], index: 1, kind: input, shape index: {}]   ;;  %s2539_s2 = inlined_call_operand.vmem [shape: f32[1,32], index: 2, kind: input, shape index: {}]   ;;  %s2540_s3 = inlined_call_operand.vmem [shape: bf16[32,128], index: 3, kind: input, shape index: {}]   ;;  %s2541_s4 = inlined_call_operand.vmem [shape: bf16[3,128], index: 4, kind: input, shape index: {}]   ;;  %s2542_s5 = inlined_call_operand.vmem [shape: f32[1,128], index: 5, kind: input, shape index: {}]   ;;  %s2543_s6 = inlined_call_operand.vmem [shape: bf16[128,4], index: 6, kind: input, shape index: {}]   ;;  %s2544_s7 = inlined_call_operand.vmem [shape: f32[1,4], index: 7, kind: input, shape index: {}]   ;;  %s2545_s8 = inlined_call_operand.vmem [shape: f32[256,4], index: 8, kind: output, shape index: {}]  }
   0x1 LB: > { %s1448_s28 = sadd.s32 4294967295, %s1743_s27   ;;  %p1452_p0 = scmp.ge.s32.totalorder %s1743_s27, 1  ;;  %s1743_s27 = sphi %s1791_s27, %s18_s27  }
   0x2   : > { %p263_p1 = scmp.lt.s32.totalorder %s1743_s27, 3 }
   0x4   : > { %p264_p2 = pnand %p1452_p0, %p263_p1 }
   0x5   : > { %s1453_s9 = sshll.u32 (!%p264_p2), %s1448_s28, 4 }
   0x6   : > { %267 = sbr.rel (%p264_p2) target bundleno = 710 (0x2c6), region = 52  ;;  %p298_p3 = scmp.lt.s32.totalorder (!%p264_p2), %s1453_s9, 31 }
   0xb   : > { %v326_v0 = vld [vmem:[%s2538_s1] sm:$0x3]  ;;  %vm396_vm0 = vcmask 1040384   ;;  %vm397_vm1 = vcmask 1041408   ;;  %v1745_v1 = vmov 65535   ;;  %s2575_s9 = smov (!%p298_p3, %s1453_s9), 31 }
   0xc   : > { %v398_v2 = vsel %vm396_vm0, 4294967295, %v1745_v1  ;;  %s1454_s10 = sshll.u32 %s2575_s9, 2  ;;  %vm371_vm2 = vcmask 23552   ;;  %v1580_v12 = vld [vmem:[%s2540_s3 + $0x8] sm:$0xff]  ;;  %v480_v13 = vld [vmem:[%s2541_s4] sm:$0x3] }
   0xd   : > { %v399_v3 = vsel %vm397_vm1, %v398_v2, 0  ;;  %s301_s13 = scalar_lea.vmem %s2537_s0, %s1454_s10  ;;  %576 = vmatpush.bf16.msra.mxu2 %v1580_v12  ;;  %v1579_v16 = vld [vmem:[%s2540_s3] sm:$0xff]  ;;  %vm545_vm3 = vcmask 261120   ;;  %v1588_v57 = vld [vmem:[%s2543_s6 + $0x38] sm:$0xff]  ;;  %v1587_v62 = vld [vmem:[%s2543_s6 + $0x30] sm:$0xff]  ;;  %vm815_vm5 = vcmask 31744  }
   0xe   : > { %v401_v4 = vand.u32 %v399_v3, %v326_v0  ;;  %v1571_v5 = vld [vmem:[%s301_s13] sm:$0xff]  ;;  %v1572_v6 = vld [vmem:[%s301_s13 + $0x8] sm:$0xff]  ;;  %v1573_v7 = vld [vmem:[%s301_s13 + $0x10] sm:$0xff]  ;;  %v482_v14 = vand.u32 %v480_v13, %v399_v3  ;;  %1589 = vmatpush.bf16.msra.mxu3 %v1588_v57  ;;  %s1456_s22 = sshll.u32 %s2575_s9, 3 }
   0xf   : > { %v1574_v8 = vld [vmem:[%s301_s13 + $0x18] sm:$0xff]  ;;  %v1575_v9 = vld [vmem:[%s301_s13 + $0x20] sm:$0xff]  ;;  %v1576_v10 = vld [vmem:[%s301_s13 + $0x28] sm:$0xff]  ;;  %s2090_s24 = scalar_lea.vmem %s2545_s8, %s1456_s22 }
  0x10   : > { %410 = vmatpush.bf16.msra.mxu0 %v401_v4  ;;  %v1814_v11 = vld [vmem:[%s301_s13 + $0x30] sm:$0xff]  ;;  %491 = vmatpush.bf16.msra.mxu1 %v482_v14  ;;  %v1824_v15 = vld [vmem:[%s301_s13 + $0x38] sm:$0xff]  ;;  %v1836_v18 = vld [vmem:[%s2539_s2] ss:$0 sm:$0xff] }
  0x11   : > { %577 = vmatpush.bf16.msra.mxu2 %v1579_v16  ;;  %v1586_v0 = vld [vmem:[%s2543_s6 + $0x28] sm:$0xff]  ;;  %v1585_v3 = vld [vmem:[%s2543_s6 + $0x20] sm:$0xff]  ;;  %v1583_v13 = vld [vmem:[%s2543_s6 + $0x10] sm:$0xff] }
  0x12   : > { %1590 = vmatpush.bf16.msra.mxu3 %v1587_v62  ;;  %v1582_v14 = vld [vmem:[%s2543_s6 + $0x8] sm:$0xff] }
  0x13   : > { %1489 = vmatmul.msk.bf16.vlgmr.msra.gmra.mxu0 %vm371_vm2, %v1571_v5  ;;  %1497 = vmatmul.msk.bf16.vlgmr.msra.gmra.mxu1 %vm371_vm2, %v1571_v5 }
  0x14   : > { %731 = vmatpush.bf16.msrb.mxu0 %v1588_v57 }
  0x16   : > { %1591 = vmatpush.bf16.msra.mxu3 %v1586_v0 }
  0x18   : > { %732 = vmatpush.bf16.msrb.mxu0 %v1587_v62 }
  0x1a   : > { %1592 = vmatpush.bf16.msra.mxu3 %v1585_v3 }
  0x1c   : > { %733 = vmatpush.bf16.msrb.mxu0 %v1586_v0 }
  0x20   : > { %734 = vmatpush.bf16.msrb.mxu0 %v1585_v3 }
  0x23   : > { %1490 = vmatmul.msk.bf16.gmra.mxu0 %vm371_vm2, %v1572_v6  ;;  %1498 = vmatmul.msk.bf16.gmra.mxu1 %vm371_vm2, %v1572_v6 }
  0x33   : > { %1491 = vmatmul.msk.bf16.gmra.mxu0 %vm371_vm2, %v1573_v7  ;;  %1499 = vmatmul.msk.bf16.gmra.mxu1 %vm371_vm2, %v1573_v7 }
  0x43   : > { %1492 = vmatmul.msk.bf16.gmra.mxu0 %vm371_vm2, %v1574_v8  ;;  %1500 = vmatmul.msk.bf16.gmra.mxu1 %vm371_vm2, %v1574_v8 }
  0x53   : > { %1493 = vmatmul.msk.bf16.gmra.mxu0 %vm371_vm2, %v1575_v9  ;;  %1501 = vmatmul.msk.bf16.gmra.mxu1 %vm371_vm2, %v1575_v9  ;;  %v1584_v9 = vld [vmem:[%s2543_s6 + $0x18] sm:$0xff] }
  0x54   : > { %735 = vmatpush.bf16.msrb.mxu0 %v1584_v9  ;;  %1593 = vmatpush.bf16.msra.mxu3 %v1584_v9 }
  0x58   : > { %736 = vmatpush.bf16.msrb.mxu0 %v1583_v13  ;;  %1594 = vmatpush.bf16.msra.mxu3 %v1583_v13 }
  0x5c   : > { %737 = vmatpush.bf16.msrb.mxu0 %v1582_v14  ;;  %1595 = vmatpush.bf16.msra.mxu3 %v1582_v14 }
  0x63   : > { %1494 = vmatmul.msk.bf16.gmra.mxu0 %vm371_vm2, %v1576_v10  ;;  %1502 = vmatmul.msk.bf16.gmra.mxu1 %vm371_vm2, %v1576_v10 }
  0x73   : > { %1495 = vmatmul.msk.bf16.gmra.mxu0 %vm371_vm2, %v1814_v11  ;;  %1503 = vmatmul.msk.bf16.gmra.mxu1 %vm371_vm2, %v1814_v11 }
  0x83   : > { %1496 = vmatmul.msk.bf16.gmra.mxu0 %vm371_vm2, %v1824_v15  ;;  %1504 = vmatmul.msk.bf16.gmra.mxu1 %vm371_vm2, %v1824_v15 }
  0x90   : > { %v412_v17 = vpop.f32.mrf.mxu0  ;;  %v493_v12 = vpop.f32.mrf.mxu1 }
  0x91   : > { %v413_v19 = vadd.f32 %v1836_v18, %v412_v17 }
  0x93   : > { %1609 = vtanh.f32 %v413_v19  ;;  %v1581_v19 = vld [vmem:[%s2543_s6] sm:$0xff] }
  0x94   : > { %738 = vmatpush.bf16.msrb.mxu0 %v1581_v19  ;;  %1596 = vmatpush.bf16.msra.mxu3 %v1581_v19 }
  0x98   : > { %v414_v20 = vpop.f32.mrf.mxu0 }
  0x99   : > { %v415_v21 = vadd.f32 %v1836_v18, %v414_v20  ;;  %v1610_v22 = vpop.eup %1609 }
  0x9b   : > { %1611 = vtanh.f32 %v415_v21 }
  0xa0   : > { %v417_v23 = vpop.f32.mrf.mxu0 }
  0xa1   : > { %v1612_v24 = vpop.eup %1611  ;;  %v418_v26 = vadd.f32 %v1836_v18, %v417_v23 }
  0xa2   : > { %v468_v25 = vpack.c.bf16 %v1612_v24, %v1610_v22  ;;  %v1897_v24 = vld [vmem:[%s2542_s5] ss:$0 sm:$0xff] }
  0xa3   : > { %1613 = vtanh.f32 %v418_v26 }
  0xa4   : > { %1513 = vmatmul.msk.bf16.vlgmr.msra.gmra.mxu2 %vm545_vm3, %v468_v25 }
  0xa8   : > { %v419_v27 = vpop.f32.mrf.mxu0 }
  0xa9   : > { %v420_v28 = vadd.f32 %v1836_v18, %v419_v27  ;;  %v1614_v29 = vpop.eup %1613 }
  0xab   : > { %1615 = vtanh.f32 %v420_v28 }
  0xb0   : > { %v422_v30 = vpop.f32.mrf.mxu0 }
  0xb1   : > { %v1616_v31 = vpop.eup %1615  ;;  %v423_v33 = vadd.f32 %v1836_v18, %v422_v30 }
  0xb2   : > { %v469_v32 = vpack.c.bf16 %v1616_v31, %v1614_v29 }
  0xb3   : > { %1617 = vtanh.f32 %v423_v33 }
  0xb4   : > { %1514 = vmatmul.msk.bf16.gmra.mxu2 %vm545_vm3, %v469_v32 }
  0xb8   : > { %v424_v34 = vpop.f32.mrf.mxu0 }
  0xb9   : > { %v425_v35 = vadd.f32 %v1836_v18, %v424_v34  ;;  %v1618_v36 = vpop.eup %1617 }
  0xbb   : > { %1619 = vtanh.f32 %v425_v35 }
  0xc0   : > { %v427_v37 = vpop.f32.mrf.mxu0 }
  0xc1   : > { %v1620_v38 = vpop.eup %1619  ;;  %v428_v40 = vadd.f32 %v1836_v18, %v427_v37 }
  0xc2   : > { %v470_v39 = vpack.c.bf16 %v1620_v38, %v1618_v36 }
  0xc3   : > { %1621 = vtanh.f32 %v428_v40 }
  0xc4   : > { %1515 = vmatmul.msk.bf16.gmra.mxu2 %vm545_vm3, %v470_v39 }
  0xc8   : > { %v429_v41 = vpop.f32.mrf.mxu0 }
  0xc9   : > { %v430_v42 = vadd.f32 %v1836_v18, %v429_v41  ;;  %v1622_v43 = vpop.eup %1621 }
  0xcb   : > { %1623 = vtanh.f32 %v430_v42 }
  0xd0   : > { %v432_v44 = vpop.f32.mrf.mxu0 }
  0xd1   : > { %v1624_v45 = vpop.eup %1623  ;;  %v433_v47 = vadd.f32 %v1836_v18, %v432_v44 }
  0xd2   : > { %v471_v46 = vpack.c.bf16 %v1624_v45, %v1622_v43 }
  0xd3   : > { %1625 = vtanh.f32 %v433_v47 }
  0xd4   : > { %1516 = vmatmul.msk.bf16.gmra.mxu2 %vm545_vm3, %v471_v46 }
  0xd8   : > { %v434_v48 = vpop.f32.mrf.mxu0 }
  0xd9   : > { %v435_v49 = vadd.f32 %v1836_v18, %v434_v48  ;;  %v1626_v50 = vpop.eup %1625 }
  0xdb   : > { %1627 = vtanh.f32 %v435_v49 }
  0xe0   : > { %v437_v51 = vpop.f32.mrf.mxu0 }
  0xe1   : > { %v1628_v52 = vpop.eup %1627  ;;  %v438_v54 = vadd.f32 %v1836_v18, %v437_v51 }
  0xe2   : > { %v472_v53 = vpack.c.bf16 %v1628_v52, %v1626_v50 }
  0xe3   : > { %1629 = vtanh.f32 %v438_v54 }
  0xe4   : > { %1517 = vmatmul.msk.bf16.gmra.mxu2 %vm545_vm3, %v472_v53 }
  0xe8   : > { %v439_v55 = vpop.f32.mrf.mxu0 }
  0xe9   : > { %v440_v56 = vadd.f32 %v1836_v18, %v439_v55  ;;  %v1630_v58 = vpop.eup %1629 }
  0xeb   : > { %1631 = vtanh.f32 %v440_v56 }
  0xf0   : > { %v442_v59 = vpop.f32.mrf.mxu0 }
  0xf1   : > { %v1632_v60 = vpop.eup %1631  ;;  %v443_v63 = vadd.f32 %v1836_v18, %v442_v59 }
  0xf2   : > { %v473_v61 = vpack.c.bf16 %v1632_v60, %v1630_v58 }
  0xf3   : > { %1633 = vtanh.f32 %v443_v63 }
  0xf4   : > { %1518 = vmatmul.msk.bf16.gmra.mxu2 %vm545_vm3, %v473_v61 }
  0xf8   : > { %v444_v1 = vpop.f32.mrf.mxu0 }
  0xf9   : > { %v445_v2 = vadd.f32 %v1836_v18, %v444_v1  ;;  %v1634_v4 = vpop.eup %1633 }
  0xfb   : > { %1635 = vtanh.f32 %v445_v2 }
 0x100   : > { %v447_v5 = vpop.f32.mrf.mxu0 }
 0x101   : > { %v1636_v6 = vpop.eup %1635  ;;  %v448_v8 = vadd.f32 %v1836_v18, %v447_v5 }
 0x102   : > { %v474_v7 = vpack.c.bf16 %v1636_v6, %v1634_v4 }
 0x103   : > { %1637 = vtanh.f32 %v448_v8 }
 0x104   : > { %1519 = vmatmul.msk.bf16.gmra.mxu2 %vm545_vm3, %v474_v7 }
 0x108   : > { %v449_v10 = vpop.f32.mrf.mxu0 }
 0x109   : > { %v450_v11 = vadd.f32 %v1836_v18, %v449_v10  ;;  %v1638_v15 = vpop.eup %1637  ;;  %v495_v18 = vpop.f32.mrf.mxu1 }
 0x10b   : > { %1639 = vtanh.f32 %v450_v11 }
 0x111   : > { %v1640_v16 = vpop.eup %1639  ;;  %v498_v20 = vpop.f32.mrf.mxu1 }
 0x112   : > { %v475_v17 = vpack.c.bf16 %v1640_v16, %v1638_v15 }
 0x114   : > { %1520 = vmatmul.msk.bf16.gmra.mxu2 %vm545_vm3, %v475_v17 }
 0x119   : > { %v500_v22 = vpop.f32.mrf.mxu1 }
 0x121   : > { %v503_v28 = vpop.f32.mrf.mxu1 }
 0x127   : > { %v579_v21 = vpop.f32.mrf.mxu2 }
 0x128   : > { %v580_v23 = vadd.f32 %v579_v21, %v493_v12 }
 0x129   : > { %v505_v34 = vpop.f32.mrf.mxu1 }
 0x12a   : > { %v623_v26 = vadd.f32 %v1897_v24, %v580_v23 }
 0x12c   : > { %v639_v30 = vmax.f32 %v623_v26, 0.0 }
 0x12f   : > { %v581_v25 = vpop.f32.mrf.mxu2 }
 0x130   : > { %v582_v27 = vadd.f32 %v581_v25, %v495_v18 }
 0x131   : > { %v508_v42 = vpop.f32.mrf.mxu1 }
 0x132   : > { %v624_v29 = vadd.f32 %v1897_v24, %v582_v27 }
 0x134   : > { %v640_v31 = vmax.f32 %v624_v29, 0.0 }
 0x136   : > { %v655_v32 = vpack.c.bf16 %v640_v31, %v639_v30 }
 0x137   : > { %v584_v33 = vpop.f32.mrf.mxu2 }
 0x138   : > { %739 = vmatmul.bf16.vlgmr.msrb.gmra.mxu0 %v655_v32  ;;  %v585_v35 = vadd.f32 %v584_v33, %v498_v20 }
 0x139   : > { %v510_v47 = vpop.f32.mrf.mxu1 }
 0x13a   : > { %v625_v37 = vadd.f32 %v1897_v24, %v585_v35 }
 0x13c   : > { %v641_v40 = vmax.f32 %v625_v37, 0.0 }
 0x13f   : > { %v586_v36 = vpop.f32.mrf.mxu2 }
 0x140   : > { %v587_v38 = vadd.f32 %v586_v36, %v500_v22 }
 0x141   : > { %v513_v55 = vpop.f32.mrf.mxu1 }
 0x142   : > { %v626_v39 = vadd.f32 %v1897_v24, %v587_v38 }
 0x144   : > { %v642_v41 = vmax.f32 %v626_v39, 0.0 }
 0x146   : > { %v656_v43 = vpack.c.bf16 %v642_v41, %v641_v40 }
 0x147   : > { %v589_v44 = vpop.f32.mrf.mxu2 }
 0x148   : > { %744 = vmatmul.bf16.vlgmr.msra.gmra.mxu3 %v656_v43  ;;  %v590_v45 = vadd.f32 %v589_v44, %v503_v28  ;;  %v780_v44 = vlaneseq }
 0x149   : > { %v515_v61 = vpop.f32.mrf.mxu1 }
 0x14a   : > { %v627_v48 = vadd.f32 %v1897_v24, %v590_v45  ;;  %v1918_v45 = vld [vmem:[%s2544_s7] ss:$0 sm:$0xff] }
 0x14c   : > { %v643_v51 = vmax.f32 %v627_v48, 0.0 }
 0x14f   : > { %v591_v46 = vpop.f32.mrf.mxu2 }
 0x150   : > { %v592_v49 = vadd.f32 %v591_v46, %v505_v34  ;;  %v1920_v46 = vand.u32 127, %v780_v44 }
 0x151   : > { %v518_v3 = vpop.f32.mrf.mxu1 }
 0x152   : > { %v628_v50 = vadd.f32 %v1897_v24, %v592_v49  ;;  %vm782_vm4 = vcmp.lt.s32.totalorder %v1920_v46, 3 }
 0x154   : > { %v644_v52 = vmax.f32 %v628_v50, 0.0 }
 0x156   : > { %v657_v53 = vpack.c.bf16 %v644_v52, %v643_v51 }
 0x157   : > { %v594_v54 = vpop.f32.mrf.mxu2 }
 0x158   : > { %749 = vmatmul.bf16.gmra.mxu3 %v657_v53  ;;  %v595_v56 = vadd.f32 %v594_v54, %v508_v42 }
 0x159   : > { %v520_v11 = vpop.f32.mrf.mxu1 }
 0x15a   : > { %v629_v58 = vadd.f32 %v1897_v24, %v595_v56 }
 0x15c   : > { %v645_v62 = vmax.f32 %v629_v58, 0.0 }
 0x15f   : > { %v596_v57 = vpop.f32.mrf.mxu2 }
 0x160   : > { %v597_v59 = vadd.f32 %v596_v57, %v510_v47 }
 0x161   : > { %v523_v17 = vpop.f32.mrf.mxu1 }
 0x162   : > { %v630_v60 = vadd.f32 %v1897_v24, %v597_v59 }
 0x164   : > { %v646_v63 = vmax.f32 %v630_v60, 0.0 }
 0x166   : > { %v658_v0 = vpack.c.bf16 %v646_v63, %v645_v62 }
 0x167   : > { %v599_v1 = vpop.f32.mrf.mxu2 }
 0x168   : > { %754 = vmatmul.bf16.gmra.mxu3 %v658_v0  ;;  %v600_v2 = vadd.f32 %v599_v1, %v513_v55 }
 0x169   : > { %v525_v23 = vpop.f32.mrf.mxu1 }
 0x16a   : > { %v631_v5 = vadd.f32 %v1897_v24, %v600_v2 }
 0x16c   : > { %v647_v8 = vmax.f32 %v631_v5, 0.0 }
 0x16f   : > { %v601_v4 = vpop.f32.mrf.mxu2 }
 0x170   : > { %v602_v6 = vadd.f32 %v601_v4, %v515_v61 }
 0x171   : > { %v528_v32 = vpop.f32.mrf.mxu1 }
 0x172   : > { %v632_v7 = vadd.f32 %v1897_v24, %v602_v6 }
 0x174   : > { %v648_v9 = vmax.f32 %v632_v7, 0.0 }
 0x176   : > { %v659_v10 = vpack.c.bf16 %v648_v9, %v647_v8 }
 0x177   : > { %v604_v12 = vpop.f32.mrf.mxu2 }
 0x178   : > { %759 = vmatmul.bf16.gmra.mxu3 %v659_v10  ;;  %v605_v13 = vadd.f32 %v604_v12, %v518_v3 }
 0x179   : > { %v530_v36 = vpop.f32.mrf.mxu1 }
 0x17a   : > { %v633_v15 = vadd.f32 %v1897_v24, %v605_v13 }
 0x17c   : > { %v649_v19 = vmax.f32 %v633_v15, 0.0 }
 0x17f   : > { %v606_v14 = vpop.f32.mrf.mxu2 }
 0x180   : > { %v607_v16 = vadd.f32 %v606_v14, %v520_v11 }
 0x182   : > { %v634_v18 = vadd.f32 %v1897_v24, %v607_v16 }
 0x184   : > { %v650_v20 = vmax.f32 %v634_v18, 0.0 }
 0x186   : > { %v660_v21 = vpack.c.bf16 %v650_v20, %v649_v19 }
 0x187   : > { %v609_v22 = vpop.f32.mrf.mxu2 }
 0x188   : > { %764 = vmatmul.bf16.gmra.mxu3 %v660_v21  ;;  %v610_v25 = vadd.f32 %v609_v22, %v523_v17 }
 0x18a   : > { %v635_v27 = vadd.f32 %v1897_v24, %v610_v25 }
 0x18c   : > { %v651_v30 = vmax.f32 %v635_v27, 0.0 }
 0x18f   : > { %v611_v26 = vpop.f32.mrf.mxu2 }
 0x190   : > { %v612_v28 = vadd.f32 %v611_v26, %v525_v23 }
 0x192   : > { %v636_v29 = vadd.f32 %v1897_v24, %v612_v28 }
 0x194   : > { %v652_v31 = vmax.f32 %v636_v29, 0.0 }
 0x196   : > { %v661_v33 = vpack.c.bf16 %v652_v31, %v651_v30 }
 0x197   : > { %v614_v34 = vpop.f32.mrf.mxu2 }
 0x198   : > { %769 = vmatmul.bf16.gmra.mxu3 %v661_v33  ;;  %v615_v35 = vadd.f32 %v614_v34, %v528_v32 }
 0x19a   : > { %v637_v38 = vadd.f32 %v1897_v24, %v615_v35 }
 0x19c   : > { %v653_v41 = vmax.f32 %v637_v38, 0.0 }
 0x19f   : > { %v616_v37 = vpop.f32.mrf.mxu2 }
 0x1a0   : > { %v617_v39 = vadd.f32 %v616_v37, %v530_v36 }
 0x1a2   : > { %v638_v40 = vadd.f32 %v1897_v24, %v617_v39 }
 0x1a4   : > { %v654_v42 = vmax.f32 %v638_v40, 0.0 }
 0x1a6   : > { %v662_v43 = vpack.c.bf16 %v654_v42, %v653_v41 }
 0x1a8   : > { %774 = vmatmul.bf16.gmra.mxu3 %v662_v43 }
 0x1b5   : > { %v740_v47 = vpop.f32.mrf.mxu0 }
 0x1b6   : > { %v1923_v48 = vadd.f32 %v1918_v45, %v740_v47 }
 0x1b8   : > { %v783_v24 = vmul.f32 %v1923_v48, %v1923_v48  ;;  %v1553_v41 = vmul.f32 -1.442695, %v1923_v48 }
 0x1ba   : > { %v799_v49 = vsel %vm782_vm4, %v783_v24, 0.0  ;;  %1641 = vpow2.f32 %v1553_v41 }
 0x1bb   : > { %v816_v50 = vsel %vm815_vm5, %v799_v49, 0.0 }
 0x1bc   : > { %817 = vadd.xlane.f32.xlu0 %v816_v50 }
 0x1bd   : > { %v742_v51 = vpop.f32.mrf.mxu0 }
 0x1be   : > { %v1932_v52 = vadd.f32 %v1918_v45, %v742_v51 }
 0x1c0   : > { %v784_v53 = vmul.f32 %v1932_v52, %v1932_v52  ;;  %v1554_v49 = vmul.f32 -1.442695, %v1932_v52 }
 0x1c2   : > { %v800_v54 = vsel %vm782_vm4, %v784_v53, 0.0  ;;  %v1642_v53 = vpop.eup %1641  ;;  %1643 = vpow2.f32 %v1554_v49 }
 0x1c3   : > { %v819_v55 = vsel %vm815_vm5, %v800_v54, 0.0 }
 0x1c4   : > { %820 = vadd.xlane.f32.xlu0 %v819_v55 }
 0x1cb   : > { %v745_v56 = vpop.f32.mrf.mxu3 }
 0x1cc   : > { %v1940_v57 = vadd.f32 %v1918_v45, %v745_v56  ;;  %v2032_v56 = vadd.f32 1.0, %v1642_v53 }
 0x1ce   : > { %v785_v58 = vmul.f32 %v1940_v57, %v1940_v57  ;;  %1645 = vrcp.f32 %v2032_v56  ;;  %vm1125_vm8 = vweird.f32 %v2032_v56 }
 0x1d0   : > { %v801_v59 = vsel %vm782_vm4, %v785_v58, 0.0 }
 0x1d1   : > { %v822_v60 = vsel %vm815_vm5, %v801_v59, 0.0 }
 0x1d2   : > { %823 = vadd.xlane.f32.xlu1 %v822_v60  ;;  %v1644_v60 = vpop.eup %1643 }
 0x1d3   : > { %v747_v61 = vpop.f32.mrf.mxu3 }
 0x1d4   : > { %v1948_v62 = vadd.f32 %v1918_v45, %v747_v61 }
 0x1d6   : > { %v786_v63 = vmul.f32 %v1948_v62, %v1948_v62 }
 0x1d8   : > { %v802_v0 = vsel %vm782_vm4, %v786_v63, 0.0 }
 0x1d9   : > { %v825_v1 = vsel %vm815_vm5, %v802_v0, 0.0  ;;  %v2040_v0 = vadd.f32 1.0, %v1644_v60 }
 0x1da   : > { %826 = vadd.xlane.f32.xlu1 %v825_v1 }
 0x1db   : > { %v750_v2 = vpop.f32.mrf.mxu3  ;;  %1647 = vrcp.f32 %v2040_v0  ;;  %vm1140_vm15 = vweird.f32 %v2040_v0 }
 0x1dc   : > { %v1956_v3 = vadd.f32 %v1918_v45, %v750_v2  ;;  %v1555_v2 = vmul.f32 -1.442695, %v1940_v57 }
 0x1de   : > { %v787_v4 = vmul.f32 %v1956_v3, %v1956_v3  ;;  %1649 = vpow2.f32 %v1555_v2 }
 0x1e0   : > { %v803_v5 = vsel %vm782_vm4, %v787_v4, 0.0 }
 0x1e1   : > { %v828_v6 = vsel %vm815_vm5, %v803_v5, 0.0  ;;  %v1646_v5 = vpop.eup %1645 }
 0x1e2   : > { %829 = vadd.xlane.f32.xlu2 %v828_v6  ;;  %vm1126_vm6 = vweird.f32 %v1646_v5 }
 0x1e3   : > { %v752_v7 = vpop.f32.mrf.mxu3  ;;  %vm2077_vm9 = vmor %vm1125_vm8, %vm1126_vm6 }
 0x1e4   : > { %v1964_v8 = vadd.f32 %v1918_v45, %v752_v7 }
 0x1e6   : > { %v788_v9 = vmul.f32 %v1964_v8, %v1964_v8  ;;  %v1558_v2 = vmul.f32 -1.442695, %v1964_v8 }
 0x1e8   : > { %v804_v10 = vsel %vm782_vm4, %v788_v9, 0.0 }
 0x1e9   : > { %v831_v11 = vsel %vm815_vm5, %v804_v10, 0.0 }
 0x1ea   : > { %832 = vadd.xlane.f32.xlu2 %v831_v11  ;;  %v1121_v11 = vmul.f32 %v1646_v5, %v2032_v56 }
 0x1eb   : > { %v755_v12 = vpop.f32.mrf.mxu3 }
 0x1ec   : > { %v1972_v13 = vadd.f32 %v1918_v45, %v755_v12 }
 0x1ee   : > { %v789_v14 = vmul.f32 %v1972_v13, %v1972_v13 }
 0x1f0   : > { %v805_v15 = vsel %vm782_vm4, %v789_v14, 0.0 }
 0x1f1   : > { %v834_v16 = vsel %vm815_vm5, %v805_v15, 0.0  ;;  %v1556_v15 = vmul.f32 -1.442695, %v1948_v62 }
 0x1f2   : > { %835 = vadd.xlane.f32.xlu0 %v834_v16  ;;  %v2057_v16 = vpop.eup %1647 }
 0x1f3   : > { %v757_v17 = vpop.f32.mrf.mxu3  ;;  %vm1141_vm13 = vweird.f32 %v2057_v16 }
 0x1f4   : > { %v1980_v18 = vadd.f32 %v1918_v45, %v757_v17  ;;  %v1122_v17 = vsub.f32 1.0, %v1121_v11  ;;  %vm2111_vm0 = vmor %vm1140_vm15, %vm1141_vm13 }
 0x1f6   : > { %v790_v19 = vmul.f32 %v1980_v18, %v1980_v18 }
 0x1f8   : > { %v806_v20 = vsel %vm782_vm4, %v790_v19, 0.0 }
 0x1f9   : > { %v837_v21 = vsel %vm815_vm5, %v806_v20, 0.0  ;;  %v1650_v20 = vpop.eup %1649 }
 0x1fa   : > { %838 = vadd.xlane.f32.xlu1 %v837_v21 }
 0x1fb   : > { %v760_v22 = vpop.f32.mrf.mxu3 }
 0x1fc   : > { %v1988_v23 = vadd.f32 %v1918_v45, %v760_v22 }
 0x1fe   : > { %v791_v25 = vmul.f32 %v1988_v23, %v1988_v23 }
 0x200   : > { %v807_v26 = vsel %vm782_vm4, %v791_v25, 0.0 }
 0x201   : > { %v840_v27 = vsel %vm815_vm5, %v807_v26, 0.0 }
 0x202   : > { %841 = vadd.xlane.f32.xlu2 %v840_v27 }
 0x203   : > { %v762_v28 = vpop.f32.mrf.mxu3 }
 0x204   : > { %v1996_v29 = vadd.f32 %v1918_v45, %v762_v28  ;;  %v1136_v28 = vmul.f32 %v2057_v16, %v2040_v0 }
 0x206   : > { %v792_v30 = vmul.f32 %v1996_v29, %v1996_v29 }
 0x208   : > { %v808_v31 = vsel %vm782_vm4, %v792_v30, 0.0  ;;  %v2068_v30 = vadd.f32 1.0, %v1650_v20 }
 0x209   : > { %v843_v32 = vsel %vm815_vm5, %v808_v31, 0.0 }
 0x20a   : > { %844 = vadd.xlane.f32.xlu0 %v843_v32  ;;  %vm1155_vm8 = vweird.f32 %v2068_v30 }
 0x20b   : > { %v765_v33 = vpop.f32.mrf.mxu3 }
 0x20c   : > { %v2004_v34 = vadd.f32 %v1918_v45, %v765_v33 }
 0x20e   : > { %v793_v35 = vmul.f32 %v2004_v34, %v2004_v34 }
 0x210   : > { %v809_v36 = vsel %vm782_vm4, %v793_v35, 0.0  ;;  %v1131_v35 = vand.u32 2147483648, %v2032_v56 }
 0x211   : > { %v846_v37 = vsel %vm815_vm5, %v809_v36, 0.0  ;;  %v1557_v36 = vmul.f32 -1.442695, %v1956_v3 }
 0x212   : > { %847 = vadd.xlane.f32.xlu1 %v846_v37 }
 0x213   : > { %v767_v38 = vpop.f32.mrf.mxu3 }
 0x214   : > { %v2012_v39 = vadd.f32 %v1918_v45, %v767_v38 }
 0x216   : > { %v794_v40 = vmul.f32 %v2012_v39, %v2012_v39 }
 0x218   : > { %v810_v42 = vsel %vm782_vm4, %v794_v40, 0.0  ;;  %v1137_v40 = vsub.f32 1.0, %v1136_v28 }
 0x219   : > { %v849_v43 = vsel %vm815_vm5, %v810_v42, 0.0 }
 0x21a   : > { %850 = vadd.xlane.f32.xlu2 %v849_v43  ;;  %v1129_v43 = vand.u32 2147483647, %v2032_v56  ;;  %v1138_v53 = vmul.f32 %v2057_v16, %v1137_v40 }
 0x21b   : > { %v770_v44 = vpop.f32.mrf.mxu3 }
 0x21c   : > { %v2021_v47 = vadd.f32 %v1918_v45, %v770_v44  ;;  %vm1130_vm12 = vcmp.eq.f32.partialorder %v1129_v43, 8.507059e+37  ;;  %v1161_v44 = vand.u32 2147483648, %v2068_v30 }
 0x21e   : > { %v795_v24 = vmul.f32 %v2021_v47, %v2021_v47 }
 0x220   : > { %v811_v50 = vsel %vm782_vm4, %v795_v24, 0.0 }
 0x221   : > { %v852_v51 = vsel %vm815_vm5, %v811_v50, 0.0 }
 0x222   : > { %853 = vadd.xlane.f32.xlu0 %v852_v51  ;;  %v1132_v51 = vor.u32 1.1754944e-38, %v1131_v35 }
 0x223   : > { %v772_v54 = vpop.f32.mrf.mxu3 }
 0x224   : > { %v2030_v55 = vadd.f32 %v1918_v45, %v772_v54 }
 0x226   : > { %v796_v58 = vmul.f32 %v2030_v55, %v2030_v55 }
 0x228   : > { %v812_v59 = vsel %vm782_vm4, %v796_v58, 0.0 }
 0x229   : > { %v855_v61 = vsel %vm815_vm5, %v812_v59, 0.0 }
 0x22a   : > { %856 = vadd.xlane.f32.xlu1 %v855_v61 }
 0x22b   : > { %v775_v63 = vpop.f32.mrf.mxu3 }
 0x22c   : > { %v2043_v1 = vadd.f32 %v1918_v45, %v775_v63 }
 0x22e   : > { %v797_v4 = vmul.f32 %v2043_v1, %v2043_v1 }
 0x22f   : > { %v818_v6 = vpop.xlane.xlu0 %817 }
 0x230   : > { %v864_v7 = vmax.f32 %v818_v6, 1e-24  ;;  %v813_v9 = vsel %vm782_vm4, %v797_v4, 0.0 }
 0x231   : > { %v858_v10 = vsel %vm815_vm5, %v813_v9, 0.0 }
 0x232   : > { %1651 = vrsqrt.f32 %v864_v7  ;;  %859 = vadd.xlane.f32.xlu2 %v858_v10  ;;  %vm886_vm10 = vweird.f32 %v864_v7 }
 0x233   : > { %v777_v12 = vpop.f32.mrf.mxu3  ;;  %1653 = vpow2.f32 %v1556_v15 }
 0x234   : > { %v2054_v14 = vadd.f32 %v1918_v45, %v777_v12  ;;  %v1123_v45 = vmul.f32 %v1646_v5, %v1122_v17  ;;  %v1144_v12 = vand.u32 2147483647, %v2040_v0 }
 0x236   : > { %v798_v19 = vmul.f32 %v2054_v14, %v2054_v14  ;;  %v1124_v37 = vadd.f32 %v1646_v5, %v1123_v45  ;;  %vm1145_vm3 = vcmp.eq.f32.partialorder %v1144_v12, 8.507059e+37 }
 0x237   : > { %v821_v21 = vpop.xlane.xlu0 %820 }
 0x238   : > { %v1652_v22 = vpop.eup %1651  ;;  %v2061_v25 = vmax.f32 %v821_v21, 1e-24  ;;  %v814_v26 = vsel %vm782_vm4, %v798_v19, 0.0  ;;  %v1128_v49 = vsel %vm2077_vm9, %v1646_v5, %v1124_v37 }
 0x239   : > { %v881_v27 = vmul.f32 %v1652_v22, %v864_v7  ;;  %v861_v32 = vsel %vm815_vm5, %v814_v26, 0.0  ;;  %v1654_v38 = vpop.eup %1653  ;;  %vm887_vm7 = vweird.f32 %v1652_v22  ;;  %v1133_v61 = vsel %vm1130_vm12, %v1132_v51, %v1128_v49 }
 0x23a   : > { %1655 = vrsqrt.f32 %v2061_v25  ;;  %862 = vadd.xlane.f32.xlu0 %v861_v32  ;;  %vm888_vm11 = vmor %vm886_vm10, %vm887_vm7  ;;  %v2085_v54 = vadd.f32 1.0, %v1654_v38  ;;  %v1146_v7 = vand.u32 2147483648, %v2040_v0  ;;  %vm896_vm1 = vweird.f32 %v2061_v25 }
 0x23b   : > { %v882_v31 = vmul.f32 %v1652_v22, %v881_v27  ;;  %1657 = vrcp.f32 %v2068_v30  ;;  %v1560_v51 = vmul.f32 -1.442695, %v1980_v18 }
 0x23c   : > { %1659 = vpow2.f32 %v1557_v36  ;;  %v1147_v21 = vor.u32 1.1754944e-38, %v1146_v7  ;;  %vm1170_vm15 = vweird.f32 %v2085_v54 }
 0x23d   : > { %v883_v33 = vmul.f32 0.5, %v882_v31  ;;  %1661 = vrcp.f32 %v2085_v54 }
 0x23f   : > { %v884_v41 = vsub.f32 1.5, %v883_v33 }
 0x240   : > { %v1656_v42 = vpop.eup %1655 }
 0x241   : > { %v885_v24 = vmul.f32 %v1652_v22, %v884_v41  ;;  %v891_v50 = vmul.f32 %v1656_v42, %v2061_v25  ;;  %v2093_v60 = vpop.eup %1657  ;;  %vm897_vm14 = vweird.f32 %v1656_v42  ;;  %v1559_v25 = vmul.f32 -1.442695, %v1972_v13 }
 0x242   : > { %v1660_v9 = vpop.eup %1659  ;;  %v1151_v10 = vmul.f32 %v2093_v60, %v2068_v30  ;;  %vm898_vm2 = vmor %vm896_vm1, %vm897_vm14  ;;  %vm1156_vm6 = vweird.f32 %v2093_v60 }
 0x243   : > { %v889_v56 = vsel %vm888_vm11, %v1652_v22, %v885_v24  ;;  %v892_v59 = vmul.f32 %v1656_v42, %v891_v50  ;;  %v2116_v19 = vadd.f32 1.0, %v1660_v9  ;;  %v2121_v0 = vpop.eup %1661  ;;  %vm2150_vm9 = vmor %vm1155_vm8, %vm1156_vm6 }
 0x244   : > { %v1040_v58 = vmul.f32 %v889_v56, %v1923_v48  ;;  %v1139_v48 = vadd.f32 %v2057_v16, %v1138_v53  ;;  %v1152_v22 = vsub.f32 1.0, %v1151_v10  ;;  %v1159_v53 = vand.u32 2147483647, %v2068_v30 }
 0x245   : > { %v824_v63 = vpop.xlane.xlu1 %823  ;;  %v893_v5 = vmul.f32 0.5, %v892_v59  ;;  %vm1171_vm13 = vweird.f32 %v2121_v0  ;;  %vm1185_vm8 = vweird.f32 %v2116_v19 }
 0x246   : > { %v1360_v4 = vsel %vm782_vm4, %v1040_v58, %v1133_v61  ;;  %v2098_v6 = vmax.f32 %v824_v63, 1e-24  ;;  %v1143_v20 = vsel %vm2111_vm0, %v2057_v16, %v1139_v48  ;;  %v1153_v36 = vmul.f32 %v2093_v60, %v1152_v22  ;;  %vm2182_vm0 = vmor %vm1170_vm15, %vm1171_vm13 }
 0x247   : > { %1376 = vst.msk [vmem:[%s2090_s24] sm:$0xff] %vm815_vm5, %v1360_v4  ;;  %v894_v11 = vsub.f32 1.5, %v893_v5  ;;  %v1148_v31 = vsel %vm1145_vm3, %v1147_v21, %v1143_v20  ;;  %v1162_v5 = vor.u32 1.1754944e-38, %v1161_v44  ;;  %vm1160_vm12 = vcmp.eq.f32.partialorder %v1159_v53, 8.507059e+37 }
 0x248   : > { %1663 = vrsqrt.f32 %v2098_v6  ;;  %vm906_vm10 = vweird.f32 %v2098_v6  ;;  %v1176_v20 = vand.u32 2147483648, %v2085_v54  ;;  %v1561_v21 = vmul.f32 -1.442695, %v1988_v23 }
 0x249   : > { %1665 = vpow2.f32 %v1558_v2  ;;  %v895_v17 = vmul.f32 %v1656_v42, %v894_v11  ;;  %v1562_v58 = vmul.f32 -1.442695, %v1996_v29 }
 0x24a   : > { %1667 = vrcp.f32 %v2116_v19 }
 0x24b   : > { %v899_v26 = vsel %vm898_vm2, %v1656_v42, %v895_v17  ;;  %v1154_v42 = vadd.f32 %v2093_v60, %v1153_v36  ;;  %v1177_v36 = vor.u32 1.1754944e-38, %v1176_v20 }
 0x24c   : > { %v1041_v27 = vmul.f32 %v899_v26, %v1932_v52  ;;  %v1166_v52 = vmul.f32 %v2121_v0, %v2085_v54 }
 0x24d   : > { %v827_v45 = vpop.xlane.xlu1 %826  ;;  %v1158_v30 = vsel %vm2150_vm9, %v2093_v60, %v1154_v42 }
 0x24e   : > { %v1664_v28 = vpop.eup %1663  ;;  %v2125_v32 = vmax.f32 %v827_v45, 1e-24  ;;  %v1361_v16 = vsel %vm782_vm4, %v1041_v27, %v1148_v31  ;;  %v1167_v41 = vsub.f32 1.0, %v1166_v52  ;;  %v1163_v10 = vsel %vm1160_vm12, %v1162_v5, %v1158_v30 }
 0x24f   : > { %v901_v33 = vmul.f32 %v1664_v28, %v2098_v6  ;;  %v1666_v35 = vpop.eup %1665  ;;  %1377 = vst.msk [vmem:[%s2090_s24 + $0x8] sm:$0xff] %vm815_vm5, %v1361_v16  ;;  %vm907_vm7 = vweird.f32 %v1664_v28  ;;  %v1174_v27 = vand.u32 2147483647, %v2085_v54 }
 0x250   : > { %1669 = vrsqrt.f32 %v2125_v32  ;;  %v2137_v38 = vadd.f32 1.0, %v1666_v35  ;;  %v2141_v43 = vpop.eup %1667  ;;  %v1168_v2 = vmul.f32 %v2121_v0, %v1167_v41  ;;  %vm908_vm11 = vmor %vm906_vm10, %vm907_vm7  ;;  %vm916_vm1 = vweird.f32 %v2125_v32 }
 0x251   : > { %v902_v37 = vmul.f32 %v1664_v28, %v901_v33  ;;  %1671 = vpow2.f32 %v1559_v25  ;;  %v1181_v4 = vmul.f32 %v2141_v43, %v2116_v19  ;;  %vm1175_vm3 = vcmp.eq.f32.partialorder %v1174_v27, 8.507059e+37 }
 0x252   : > { %1673 = vrcp.f32 %v2137_v38  ;;  %v1169_v15 = vadd.f32 %v2121_v0, %v1168_v2  ;;  %vm1186_vm6 = vweird.f32 %v2141_v43  ;;  %vm1200_vm15 = vweird.f32 %v2137_v38 }
 0x253   : > { %v903_v40 = vmul.f32 0.5, %v902_v37  ;;  %v1182_v12 = vsub.f32 1.0, %v1181_v4  ;;  %vm2214_vm9 = vmor %vm1185_vm8, %vm1186_vm6 }
 0x254   : > { %v1173_v54 = vsel %vm2182_vm0, %v2121_v0, %v1169_v15 }
 0x255   : > { %v904_v24 = vsub.f32 1.5, %v903_v40  ;;  %v830_v49 = vpop.xlane.xlu2 %829  ;;  %v1183_v33 = vmul.f32 %v2141_v43, %v1182_v12  ;;  %v1178_v41 = vsel %vm1175_vm3, %v1177_v36, %v1173_v54  ;;  %v1563_v12 = vmul.f32 -1.442695, %v2004_v34 }
 0x256   : > { %v1670_v50 = vpop.eup %1669  ;;  %v2147_v56 = vmax.f32 %v830_v49, 1e-24 }
 0x257   : > { %v905_v59 = vmul.f32 %v1664_v28, %v904_v24  ;;  %v911_v61 = vmul.f32 %v1670_v50, %v2125_v32  ;;  %v1672_v63 = vpop.eup %1671  ;;  %vm917_vm14 = vweird.f32 %v1670_v50  ;;  %v1184_v24 = vadd.f32 %v2141_v43, %v1183_v33 }
 0x258   : > { %1675 = vrsqrt.f32 %v2147_v56  ;;  %v2165_v9 = vadd.f32 1.0, %v1672_v63  ;;  %v2171_v17 = vpop.eup %1673  ;;  %vm918_vm2 = vmor %vm916_vm1, %vm917_vm14  ;;  %vm926_vm10 = vweird.f32 %v2147_v56 }
 0x259   : > { %v909_v7 = vsel %vm908_vm11, %v1664_v28, %v905_v59  ;;  %v912_v6 = vmul.f32 %v1670_v50, %v911_v61  ;;  %1677 = vpow2.f32 %v1560_v51  ;;  %v1196_v35 = vmul.f32 %v2171_v17, %v2137_v38 }
 0x25a   : > { %v1042_v48 = vmul.f32 %v909_v7, %v1940_v57  ;;  %1679 = vrcp.f32 %v2165_v9  ;;  %v1189_v59 = vand.u32 2147483647, %v2116_v19  ;;  %vm1201_vm13 = vweird.f32 %v2171_v17 }
 0x25b   : > { %v913_v11 = vmul.f32 0.5, %v912_v6  ;;  %v1197_v44 = vsub.f32 1.0, %v1196_v35  ;;  %v1204_v28 = vand.u32 2147483647, %v2137_v38  ;;  %vm2246_vm0 = vmor %vm1200_vm15, %vm1201_vm13  ;;  %vm1215_vm8 = vweird.f32 %v2165_v9 }
 0x25c   : > { %v1362_v60 = vsel %vm782_vm4, %v1042_v48, %v1163_v10  ;;  %vm1190_vm12 = vcmp.eq.f32.partialorder %v1189_v59, 8.507059e+37  ;;  %v1564_v59 = vmul.f32 -1.442695, %v2012_v39 }
 0x25d   : > { %1378 = vst.msk [vmem:[%s2090_s24 + $0x10] sm:$0xff] %vm815_vm5, %v1362_v60  ;;  %v914_v57 = vsub.f32 1.5, %v913_v11  ;;  %v833_v22 = vpop.xlane.xlu2 %832  ;;  %v1198_v5 = vmul.f32 %v2171_v17, %v1197_v44  ;;  %vm1205_vm3 = vcmp.eq.f32.partialorder %v1204_v28, 8.507059e+37 }
 0x25e   : > { %v1676_v26 = vpop.eup %1675  ;;  %v2179_v45 = vmax.f32 %v833_v22, 1e-24  ;;  %v1206_v22 = vand.u32 2147483648, %v2137_v38 }
 0x25f   : > { %v915_v25 = vmul.f32 %v1670_v50, %v914_v57  ;;  %v921_v31 = vmul.f32 %v1676_v26, %v2147_v56  ;;  %v1678_v16 = vpop.eup %1677  ;;  %vm927_vm7 = vweird.f32 %v1676_v26 }
 0x260   : > { %1681 = vrsqrt.f32 %v2179_v45  ;;  %v2197_v40 = vadd.f32 1.0, %v1678_v16  ;;  %v2203_v49 = vpop.eup %1679  ;;  %vm928_vm11 = vmor %vm926_vm10, %vm927_vm7  ;;  %vm936_vm1 = vweird.f32 %v2179_v45 }
 0x261   : > { %1683 = vpow2.f32 %v1561_v21  ;;  %v919_v32 = vsel %vm918_vm2, %v1670_v50, %v915_v25  ;;  %v922_v52 = vmul.f32 %v1676_v26, %v921_v31  ;;  %v1191_v50 = vand.u32 2147483648, %v2116_v19 }
 0x262   : > { %v1043_v37 = vmul.f32 %v919_v32, %v1948_v62  ;;  %1685 = vrcp.f32 %v2197_v40  ;;  %v1211_v7 = vmul.f32 %v2203_v49, %v2165_v9  ;;  %v1188_v19 = vsel %vm2214_vm9, %v2141_v43, %v1184_v24 }
 0x263   : > { %v923_v42 = vmul.f32 0.5, %v922_v52  ;;  %v1192_v6 = vor.u32 1.1754944e-38, %v1191_v50  ;;  %v1199_v21 = vadd.f32 %v2171_v17, %v1198_v5  ;;  %v1207_v32 = vor.u32 1.1754944e-38, %v1206_v22 }
 0x264   : > { %v1363_v0 = vsel %vm782_vm4, %v1043_v37, %v1178_v41  ;;  %v1212_v20 = vsub.f32 1.0, %v1211_v7  ;;  %vm1216_vm6 = vweird.f32 %v2203_v49  ;;  %vm1230_vm15 = vweird.f32 %v2197_v40 }
 0x265   : > { %1379 = vst.msk [vmem:[%s2090_s24 + $0x18] sm:$0xff] %vm815_vm5, %v1363_v0  ;;  %v924_v51 = vsub.f32 1.5, %v923_v42  ;;  %v836_v62 = vpop.xlane.xlu0 %835  ;;  %v1193_v60 = vsel %vm1190_vm12, %v1192_v6, %v1188_v19  ;;  %v1203_v38 = vsel %vm2246_vm0, %v2171_v17, %v1199_v21  ;;  %vm2278_vm9 = vmor %vm1215_vm8, %vm1216_vm6  ;;  %v1236_v21 = vand.u32 2147483648, %v2197_v40 }
 0x266   : > { %v1682_v53 = vpop.eup %1681  ;;  %v2211_v61 = vmax.f32 %v836_v62, 1e-24  ;;  %v1213_v54 = vmul.f32 %v2203_v49, %v1212_v20  ;;  %v1208_v42 = vsel %vm1205_vm3, %v1207_v32, %v1203_v38  ;;  %v1221_v62 = vand.u32 2147483648, %v2165_v9 }
 0x267   : > { %v1684_v63 = vpop.eup %1683  ;;  %v925_v4 = vmul.f32 %v1676_v26, %v924_v51  ;;  %v931_v30 = vmul.f32 %v1682_v53, %v2179_v45  ;;  %vm937_vm14 = vweird.f32 %v1682_v53  ;;  %v1237_v38 = vor.u32 1.1754944e-38, %v1236_v21 }
 0x268   : > { %1687 = vrsqrt.f32 %v2211_v61  ;;  %v2228_v56 = vadd.f32 1.0, %v1684_v63  ;;  %v2236_v57 = vpop.eup %1685  ;;  %vm938_vm2 = vmor %vm936_vm1, %vm937_vm14  ;;  %v1214_v50 = vadd.f32 %v2203_v49, %v1213_v54  ;;  %v1219_v63 = vand.u32 2147483647, %v2165_v9 }
 0x269   : > { %v929_v48 = vsel %vm928_vm11, %v1676_v26, %v925_v4  ;;  %v932_v10 = vmul.f32 %v1682_v53, %v931_v30  ;;  %1689 = vpow2.f32 %v1562_v58  ;;  %v1226_v36 = vmul.f32 %v2236_v57, %v2197_v40 }
 0x26a   : > { %v1044_v11 = vmul.f32 %v929_v48, %v1956_v3  ;;  %1691 = vrcp.f32 %v2228_v56  ;;  %vm946_vm10 = vweird.f32 %v2211_v61  ;;  %v1218_v9 = vsel %vm2278_vm9, %v2203_v49, %v1214_v50 }
 0x26b   : > { %v933_v15 = vmul.f32 0.5, %v932_v10  ;;  %1693 = vpow2.f32 %v1563_v12  ;;  %v1227_v24 = vsub.f32 1.0, %v1226_v36  ;;  %v1222_v6 = vor.u32 1.1754944e-38, %v1221_v62 }
 0x26c   : > { %v1364_v43 = vsel %vm782_vm4, %v1044_v11, %v1193_v60  ;;  %vm1220_vm12 = vcmp.eq.f32.partialorder %v1219_v63, 8.507059e+37  ;;  %vm1231_vm13 = vweird.f32 %v2236_v57  ;;  %v1251_v50 = vand.u32 2147483648, %v2228_v56 }
 0x26d   : > { %1380 = vst.msk [vmem:[%s2090_s24 + $0x20] sm:$0xff] %vm815_vm5, %v1364_v43  ;;  %v934_v26 = vsub.f32 1.5, %v933_v15  ;;  %v839_v3 = vpop.xlane.xlu1 %838  ;;  %v1228_v7 = vmul.f32 %v2236_v57, %v1227_v24  ;;  %v1223_v12 = vsel %vm1220_vm12, %v1222_v6, %v1218_v9  ;;  %vm2310_vm0 = vmor %vm1230_vm15, %vm1231_vm13 }
 0x26e   : > { %v1688_v27 = vpop.eup %1687  ;;  %v2244_v25 = vmax.f32 %v839_v3, 1e-24  ;;  %v1565_v3 = vmul.f32 -1.442695, %v2021_v47 }
 0x26f   : > { %v935_v16 = vmul.f32 %v1682_v53, %v934_v26  ;;  %v941_v33 = vmul.f32 %v1688_v27, %v2211_v61  ;;  %v1690_v35 = vpop.eup %1689  ;;  %vm947_vm7 = vweird.f32 %v1688_v27  ;;  %v1229_v20 = vadd.f32 %v2236_v57, %v1228_v7 }
 0x270   : > { %1695 = vrsqrt.f32 %v2244_v25  ;;  %v2261_v41 = vadd.f32 1.0, %v1690_v35  ;;  %v2263_v0 = vpop.eup %1691  ;;  %vm948_vm11 = vmor %vm946_vm10, %vm947_vm7  ;;  %vm956_vm1 = vweird.f32 %v2244_v25  ;;  %vm1245_vm7 = vweird.f32 %v2228_v56 }
 0x271   : > { %v939_v52 = vsel %vm938_vm2, %v1682_v53, %v935_v16  ;;  %v942_v45 = vmul.f32 %v1688_v27, %v941_v33  ;;  %v1694_v51 = vpop.eup %1693  ;;  %v1241_v19 = vmul.f32 %v2263_v0, %v2228_v56  ;;  %vm1246_vm6 = vweird.f32 %v2263_v0 }
 0x272   : > { %v1045_v37 = vmul.f32 %v939_v52, %v1964_v8  ;;  %1697 = vrcp.f32 %v2261_v41  ;;  %v2292_v48 = vadd.f32 1.0, %v1694_v51  ;;  %vm2344_vm9 = vmor %vm1245_vm7, %vm1246_vm6  ;;  %vm1260_vm15 = vweird.f32 %v2261_v41 }
 0x273   : > { %v943_v44 = vmul.f32 0.5, %v942_v45  ;;  %v1242_v15 = vsub.f32 1.0, %v1241_v19  ;;  %v1252_v19 = vor.u32 1.1754944e-38, %v1251_v50 }
 0x274   : > { %v1365_v17 = vsel %vm782_vm4, %v1045_v37, %v1208_v42  ;;  %vm1275_vm7 = vweird.f32 %v2292_v48 }
 0x275   : > { %1381 = vst.msk [vmem:[%s2090_s24 + $0x28] sm:$0xff] %vm815_vm5, %v1365_v17  ;;  %v944_v8 = vsub.f32 1.5, %v943_v44  ;;  %v842_v53 = vpop.xlane.xlu2 %841  ;;  %v1243_v54 = vmul.f32 %v2263_v0, %v1242_v15 }
 0x276   : > { %v1696_v58 = vpop.eup %1695  ;;  %v2275_v2 = vmax.f32 %v842_v53, 1e-24  ;;  %v1566_v53 = vmul.f32 -1.442695, %v2030_v55 }
 0x277   : > { %v945_v30 = vmul.f32 %v1688_v27, %v944_v8  ;;  %v951_v5 = vmul.f32 %v1696_v58, %v2244_v25  ;;  %vm957_vm14 = vweird.f32 %v1696_v58  ;;  %v1244_v17 = vadd.f32 %v2263_v0, %v1243_v54 }
 0x278   : > { %1699 = vrsqrt.f32 %v2275_v2  ;;  %v2299_v43 = vpop.eup %1697  ;;  %vm958_vm2 = vmor %vm956_vm1, %vm957_vm14  ;;  %vm966_vm10 = vweird.f32 %v2275_v2 }
 0x279   : > { %v949_v61 = vsel %vm948_vm11, %v1688_v27, %v945_v30  ;;  %v952_v10 = vmul.f32 %v1696_v58, %v951_v5  ;;  %1701 = vpow2.f32 %v1564_v59  ;;  %v1234_v27 = vand.u32 2147483647, %v2197_v40 }
 0x27a   : > { %v1046_v11 = vmul.f32 %v949_v61, %v1972_v13  ;;  %1703 = vrcp.f32 %v2292_v48  ;;  %v1256_v36 = vmul.f32 %v2299_v43, %v2261_v41  ;;  %v1233_v40 = vsel %vm2310_vm0, %v2236_v57, %v1229_v20 }
 0x27b   : > { %v953_v60 = vmul.f32 0.5, %v952_v10  ;;  %vm1235_vm3 = vcmp.eq.f32.partialorder %v1234_v27, 8.507059e+37  ;;  %vm1261_vm13 = vweird.f32 %v2299_v43  ;;  %v1264_v20 = vand.u32 2147483647, %v2261_v41 }
 0x27c   : > { %v1366_v49 = vsel %vm782_vm4, %v1046_v11, %v1223_v12  ;;  %v1238_v42 = vsel %vm1235_vm3, %v1237_v38, %v1233_v40  ;;  %v1257_v24 = vsub.f32 1.0, %v1256_v36  ;;  %vm2375_vm0 = vmor %vm1260_vm15, %vm1261_vm13 }
 0x27d   : > { %1382 = vst.msk [vmem:[%s2090_s24 + $0x30] sm:$0xff] %vm815_vm5, %v1366_v49  ;;  %v954_v22 = vsub.f32 1.5, %v953_v60  ;;  %v845_v13 = vpop.xlane.xlu0 %844  ;;  %v1266_v49 = vand.u32 2147483648, %v2261_v41  ;;  %vm1265_vm3 = vcmp.eq.f32.partialorder %v1264_v20, 8.507059e+37 }
 0x27e   : > { %v1700_v26 = vpop.eup %1699  ;;  %v2308_v28 = vmax.f32 %v845_v13, 1e-24  ;;  %v1258_v7 = vmul.f32 %v2299_v43, %v1257_v24  ;;  %v1281_v24 = vand.u32 2147483648, %v2292_v48 }
 0x27f   : > { %v955_v16 = vmul.f32 %v1696_v58, %v954_v22  ;;  %v961_v33 = vmul.f32 %v1700_v26, %v2275_v2  ;;  %v1702_v35 = vpop.eup %1701  ;;  %vm967_vm8 = vweird.f32 %v1700_v26  ;;  %v1267_v54 = vor.u32 1.1754944e-38, %v1266_v49 }
 0x280   : > { %1705 = vrsqrt.f32 %v2308_v28  ;;  %v2325_v45 = vpop.eup %1703  ;;  %v2327_v37 = vadd.f32 1.0, %v1702_v35  ;;  %vm968_vm11 = vmor %vm966_vm10, %vm967_vm8  ;;  %v1259_v60 = vadd.f32 %v2299_v43, %v1258_v7  ;;  %vm976_vm1 = vweird.f32 %v2308_v28 }
 0x281   : > { %v959_v32 = vsel %vm958_vm2, %v1696_v58, %v955_v16  ;;  %v962_v25 = vmul.f32 %v1700_v26, %v961_v33  ;;  %1707 = vpow2.f32 %v1565_v3  ;;  %v1271_v8 = vmul.f32 %v2325_v45, %v2292_v48 }
 0x282   : > { %v1047_v52 = vmul.f32 %v959_v32, %v1980_v18  ;;  %v1249_v58 = vand.u32 2147483647, %v2228_v56  ;;  %1709 = vrcp.f32 %v2327_v37  ;;  %v1248_v56 = vsel %vm2344_vm9, %v2263_v0, %v1244_v17 }
 0x283   : > { %v963_v44 = vmul.f32 0.5, %v962_v25  ;;  %v1272_v61 = vsub.f32 1.0, %v1271_v8  ;;  %v1263_v35 = vsel %vm2375_vm0, %v2299_v43, %v1259_v60  ;;  %vm1276_vm6 = vweird.f32 %v2325_v45 }
 0x284   : > { %v1367_v57 = vsel %vm782_vm4, %v1047_v52, %v1238_v42  ;;  %vm1250_vm12 = vcmp.eq.f32.partialorder %v1249_v58, 8.507059e+37  ;;  %v1268_v25 = vsel %vm1265_vm3, %v1267_v54, %v1263_v35  ;;  %vm2401_vm8 = vmor %vm1275_vm7, %vm1276_vm6  ;;  %vm1290_vm15 = vweird.f32 %v2327_v37 }
 0x285   : > { %1383 = vst.msk [vmem:[%s2090_s24 + $0x38] sm:$0xff] %vm815_vm5, %v1367_v57  ;;  %v964_v18 = vsub.f32 1.5, %v963_v44  ;;  %v848_v51 = vpop.xlane.xlu1 %847  ;;  %v1253_v11 = vsel %vm1250_vm12, %v1252_v19, %v1248_v56  ;;  %v1273_v13 = vmul.f32 %v2325_v45, %v1272_v61  ;;  %v1294_v60 = vand.u32 2147483647, %v2327_v37 }
 0x286   : > { %v1706_v62 = vpop.eup %1705  ;;  %v2341_v59 = vmax.f32 %v848_v51, 1e-24  ;;  %v1279_v51 = vand.u32 2147483647, %v2292_v48  ;;  %v1282_v48 = vor.u32 1.1754944e-38, %v1281_v24 }
 0x287   : > { %v965_v4 = vmul.f32 %v1700_v26, %v964_v18  ;;  %v971_v30 = vmul.f32 %v1706_v62, %v2308_v28  ;;  %v1708_v5 = vpop.eup %1707  ;;  %vm977_vm14 = vweird.f32 %v1706_v62  ;;  %v1274_v38 = vadd.f32 %v2325_v45, %v1273_v13 }
 0x288   : > { %1711 = vrsqrt.f32 %v2341_v59  ;;  %v2357_v10 = vadd.f32 1.0, %v1708_v5  ;;  %v2363_v15 = vpop.eup %1709  ;;  %vm978_vm2 = vmor %vm976_vm1, %vm977_vm14  ;;  %vm986_vm10 = vweird.f32 %v2341_v59  ;;  %vm1280_vm12 = vcmp.eq.f32.partialorder %v1279_v51, 8.507059e+37 }
 0x289   : > { %v969_v9 = vsel %vm968_vm11, %v1700_v26, %v965_v4  ;;  %v972_v6 = vmul.f32 %v1706_v62, %v971_v30  ;;  %1713 = vpow2.f32 %v1566_v53  ;;  %v1567_v26 = vmul.f32 -1.442695, %v2043_v1 }
 0x28a   : > { %v1048_v2 = vmul.f32 %v969_v9, %v1988_v23  ;;  %1715 = vrcp.f32 %v2357_v10  ;;  %v1286_v41 = vmul.f32 %v2363_v15, %v2327_v37  ;;  %v1278_v18 = vsel %vm2401_vm8, %v2325_v45, %v1274_v38 }
 0x28b   : > { %v973_v12 = vmul.f32 0.5, %v972_v6  ;;  %v1568_v30 = vmul.f32 -1.442695, %v2054_v14  ;;  %v1283_v56 = vsel %vm1280_vm12, %v1282_v48, %v1278_v18  ;;  %vm1291_vm13 = vweird.f32 %v2363_v15 }
 0x28c   : > { %v1368_v0 = vsel %vm782_vm4, %v1048_v2, %v1253_v11  ;;  %v1287_v52 = vsub.f32 1.0, %v1286_v41  ;;  %v1296_v11 = vand.u32 2147483648, %v2327_v37  ;;  %vm2438_vm0 = vmor %vm1290_vm15, %vm1291_vm13  ;;  %vm1295_vm3 = vcmp.eq.f32.partialorder %v1294_v60, 8.507059e+37 }
 0x28d   : > { %1384 = vst.msk [vmem:[%s2090_s24 + $0x40] sm:$0xff] %vm815_vm5, %v1368_v0  ;;  %v974_v23 = vsub.f32 1.5, %v973_v12  ;;  %v851_v21 = vpop.xlane.xlu2 %850  ;;  %vm1305_vm8 = vweird.f32 %v2357_v10 }
 0x28e   : > { %v1712_v22 = vpop.eup %1711  ;;  %v2372_v3 = vmax.f32 %v851_v21, 1e-24  ;;  %v1288_v63 = vmul.f32 %v2363_v15, %v1287_v52 }
 0x28f   : > { %v975_v31 = vmul.f32 %v1706_v62, %v974_v23  ;;  %v981_v16 = vmul.f32 %v1712_v22, %v2341_v59  ;;  %v1714_v33 = vpop.eup %1713  ;;  %vm987_vm9 = vweird.f32 %v1712_v22 }
 0x290   : > { %1717 = vrsqrt.f32 %v2372_v3  ;;  %v2391_v32 = vadd.f32 1.0, %v1714_v33  ;;  %v2396_v44 = vpop.eup %1715  ;;  %vm988_vm11 = vmor %vm986_vm10, %vm987_vm9  ;;  %v1289_v61 = vadd.f32 %v2363_v15, %v1288_v63  ;;  %vm996_vm1 = vweird.f32 %v2372_v3 }
 0x291   : > { %v979_v36 = vsel %vm978_vm2, %v1706_v62, %v975_v31  ;;  %v982_v40 = vmul.f32 %v1712_v22, %v981_v16  ;;  %1719 = vpow2.f32 %v1567_v26  ;;  %v1301_v4 = vmul.f32 %v2396_v44, %v2357_v10 }
 0x292   : > { %v1049_v28 = vmul.f32 %v979_v36, %v1996_v29  ;;  %1721 = vrcp.f32 %v2391_v32  ;;  %v1293_v13 = vsel %vm2438_vm0, %v2363_v15, %v1289_v61  ;;  %v1297_v26 = vor.u32 1.1754944e-38, %v1296_v11 }
 0x293   : > { %v983_v43 = vmul.f32 0.5, %v982_v40  ;;  %v1302_v9 = vsub.f32 1.0, %v1301_v4  ;;  %vm1306_vm6 = vweird.f32 %v2396_v44  ;;  %v1311_v40 = vand.u32 2147483648, %v2357_v10 }
 0x294   : > { %v1369_v42 = vsel %vm782_vm4, %v1049_v28, %v1268_v25  ;;  %v1298_v33 = vsel %vm1295_vm3, %v1297_v26, %v1293_v13  ;;  %vm2467_vm9 = vmor %vm1305_vm8, %vm1306_vm6  ;;  %v1326_v4 = vand.u32 2147483648, %v2391_v32  ;;  %vm1320_vm15 = vweird.f32 %v2391_v32 }
 0x295   : > { %1385 = vst.msk [vmem:[%s2090_s24 + $0x48] sm:$0xff] %vm815_vm5, %v1369_v42  ;;  %v984_v57 = vsub.f32 1.5, %v983_v43  ;;  %v854_v17 = vpop.xlane.xlu0 %853  ;;  %v1309_v43 = vand.u32 2147483647, %v2357_v10 }
 0x296   : > { %v1718_v50 = vpop.eup %1717  ;;  %v2409_v62 = vmax.f32 %v854_v17, 1e-24  ;;  %v1327_v61 = vor.u32 1.1754944e-38, %v1326_v4 }
 0x297   : > { %v985_v8 = vmul.f32 %v1712_v22, %v984_v57  ;;  %v991_v53 = vmul.f32 %v1718_v50, %v2372_v3  ;;  %v1720_v58 = vpop.eup %1719  ;;  %vm997_vm14 = vweird.f32 %v1718_v50  ;;  %vm1310_vm12 = vcmp.eq.f32.partialorder %v1309_v43, 8.507059e+37 }
 0x298   : > { %1723 = vrsqrt.f32 %v2409_v62  ;;  %v2420_v7 = vadd.f32 1.0, %v1720_v58  ;;  %v2426_v2 = vpop.eup %1721  ;;  %vm998_vm2 = vmor %vm996_vm1, %vm997_vm14  ;;  %vm1006_vm10 = vweird.f32 %v2409_v62 }
 0x299   : > { %v989_v45 = vsel %vm988_vm11, %v1712_v22, %v985_v8  ;;  %v992_v5 = vmul.f32 %v1718_v50, %v991_v53  ;;  %1725 = vpow2.f32 %v1568_v30  ;;  %v1303_v22 = vmul.f32 %v2396_v44, %v1302_v9 }
 0x29a   : > { %v1050_v59 = vmul.f32 %v989_v45, %v2004_v34  ;;  %1727 = vrcp.f32 %v2420_v7  ;;  %v1316_v37 = vmul.f32 %v2426_v2, %v2391_v32  ;;  %vm1321_vm13 = vweird.f32 %v2426_v2 }
 0x29b   : > { %v993_v19 = vmul.f32 0.5, %v992_v5  ;;  %v1304_v36 = vadd.f32 %v2396_v44, %v1303_v22  ;;  %vm2493_vm0 = vmor %vm1320_vm15, %vm1321_vm13  ;;  %vm1335_vm8 = vweird.f32 %v2420_v7 }
 0x29c   : > { %v1370_v6 = vsel %vm782_vm4, %v1050_v59, %v1283_v56  ;;  %v1317_v35 = vsub.f32 1.0, %v1316_v37 }
 0x29d   : > { %1386 = vst.msk [vmem:[%s2090_s24 + $0x50] sm:$0xff] %vm815_vm5, %v1370_v6  ;;  %v994_v34 = vsub.f32 1.5, %v993_v19  ;;  %v857_v12 = vpop.xlane.xlu1 %856  ;;  %v1308_v10 = vsel %vm2467_vm9, %v2396_v44, %v1304_v36 }
 0x29e   : > { %v1724_v0 = vpop.eup %1723  ;;  %v2433_v49 = vmax.f32 %v857_v12, 1e-24  ;;  %v1318_v57 = vmul.f32 %v2426_v2, %v1317_v35 }
 0x29f   : > { %v995_v23 = vmul.f32 %v1718_v50, %v994_v34  ;;  %v1001_v21 = vmul.f32 %v1724_v0, %v2409_v62  ;;  %v1726_v16 = vpop.eup %1725  ;;  %vm1007_vm7 = vweird.f32 %v1724_v0 }
 0x2a0   : > { %1729 = vrsqrt.f32 %v2433_v49  ;;  %v2456_v15 = vpop.eup %1727  ;;  %v2459_v28 = vadd.f32 1.0, %v1726_v16  ;;  %vm1008_vm11 = vmor %vm1006_vm10, %vm1007_vm7  ;;  %v1319_v44 = vadd.f32 %v2426_v2, %v1318_v57  ;;  %vm1016_vm1 = vweird.f32 %v2433_v49 }
 0x2a1   : > { %v999_v27 = vsel %vm998_vm2, %v1718_v50, %v995_v23  ;;  %v1002_v31 = vmul.f32 %v1724_v0, %v1001_v21  ;;  %v1331_v17 = vmul.f32 %v2456_v15, %v2420_v7  ;;  %v1312_v50 = vor.u32 1.1754944e-38, %v1311_v40 }
 0x2a2   : > { %v1051_v3 = vmul.f32 %v999_v27, %v2012_v39  ;;  %v1323_v6 = vsel %vm2493_vm0, %v2426_v2, %v1319_v44  ;;  %vm1336_vm6 = vweird.f32 %v2456_v15  ;;  %v1341_v23 = vand.u32 2147483648, %v2420_v7 }
 0x2a3   : > { %v1003_v41 = vmul.f32 0.5, %v1002_v31  ;;  %v1313_v8 = vsel %vm1310_vm12, %v1312_v50, %v1308_v10  ;;  %v1332_v58 = vsub.f32 1.0, %v1331_v17  ;;  %vm1337_vm9 = vmor %vm1335_vm8, %vm1336_vm6  ;;  %vm1350_vm15 = vweird.f32 %v2459_v28 }
 0x2a4   : > { %v1371_v54 = vsel %vm782_vm4, %v1051_v3, %v1298_v33  ;;  %v1342_v27 = vor.u32 1.1754944e-38, %v1341_v23 }
 0x2a5   : > { %1387 = vst.msk [vmem:[%s2090_s24 + $0x58] sm:$0xff] %vm815_vm5, %v1371_v54  ;;  %v1004_v38 = vsub.f32 1.5, %v1003_v41  ;;  %v860_v39 = vpop.xlane.xlu2 %859  ;;  %v1333_v9 = vmul.f32 %v2456_v15, %v1332_v58 }
 0x2a6   : > { %v1730_v25 = vpop.eup %1729  ;;  %v2465_v52 = vmax.f32 %v860_v39, 1e-24 }
 0x2a7   : > { %v1005_v24 = vmul.f32 %v1724_v0, %v1004_v38  ;;  %v1011_v29 = vmul.f32 %v1730_v25, %v2433_v49  ;;  %vm1017_vm14 = vweird.f32 %v1730_v25  ;;  %v1334_v2 = vadd.f32 %v2456_v15, %v1333_v9 }
 0x2a8   : > { %1731 = vrsqrt.f32 %v2465_v52  ;;  %vm1018_vm2 = vmor %vm1016_vm1, %vm1017_vm14  ;;  %vm1026_vm10 = vweird.f32 %v2465_v52 }
 0x2a9   : > { %1733 = vrcp.f32 %v2459_v28  ;;  %v1009_v18 = vsel %vm1008_vm11, %v1724_v0, %v1005_v24  ;;  %v1012_v51 = vmul.f32 %v1730_v25, %v1011_v29  ;;  %v1338_v26 = vsel %vm1337_vm9, %v2456_v15, %v1334_v2 }
 0x2aa   : > { %v1052_v62 = vmul.f32 %v1009_v18, %v2021_v47  ;;  %v1324_v47 = vand.u32 2147483647, %v2391_v32  ;;  %v1356_v15 = vand.u32 2147483648, %v2459_v28 }
 0x2ab   : > { %v1013_v53 = vmul.f32 0.5, %v1012_v51 }
 0x2ac   : > { %v1372_v63 = vsel %vm782_vm4, %v1052_v62, %v1313_v8  ;;  %vm1325_vm3 = vcmp.eq.f32.partialorder %v1324_v47, 8.507059e+37 }
 0x2ad   : > { %1388 = vst.msk [vmem:[%s2090_s24 + $0x60] sm:$0xff] %vm815_vm5, %v1372_v63  ;;  %v1014_v30 = vsub.f32 1.5, %v1013_v53  ;;  %v863_v19 = vpop.xlane.xlu0 %862  ;;  %v1328_v60 = vsel %vm1325_vm3, %v1327_v61, %v1323_v6 }
 0x2ae   : > { %v1732_v48 = vpop.eup %1731  ;;  %v879_v32 = vmax.f32 %v863_v19, 1e-24 }
 0x2af   : > { %v2491_v45 = vpop.eup %1733  ;;  %v1015_v59 = vmul.f32 %v1730_v25, %v1014_v30  ;;  %v1021_v56 = vmul.f32 %v1732_v48, %v2465_v52  ;;  %vm1027_vm7 = vweird.f32 %v1732_v48 }
 0x2b0   : > { %v1346_v12 = vmul.f32 %v2491_v45, %v2459_v28  ;;  %1735 = vrsqrt.f32 %v879_v32  ;;  %vm1028_vm11 = vmor %vm1026_vm10, %vm1027_vm7  ;;  %vm1351_vm13 = vweird.f32 %v2491_v45  ;;  %vm1036_vm1 = vweird.f32 %v879_v32 }
 0x2b1   : > { %v1019_v11 = vsel %vm1018_vm2, %v1730_v25, %v1015_v59  ;;  %v1022_v34 = vmul.f32 %v1732_v48, %v1021_v56  ;;  %vm1352_vm0 = vmor %vm1350_vm15, %vm1351_vm13  ;;  %v1357_v25 = vor.u32 1.1754944e-38, %v1356_v15 }
 0x2b2   : > { %v1053_v0 = vmul.f32 %v1019_v11, %v2030_v55  ;;  %v1347_v22 = vsub.f32 1.0, %v1346_v12  ;;  %v1339_v55 = vand.u32 2147483647, %v2420_v7 }
 0x2b3   : > { %v1023_v49 = vmul.f32 0.5, %v1022_v34 }
 0x2b4   : > { %v1373_v20 = vsel %vm782_vm4, %v1053_v0, %v1328_v60  ;;  %v1348_v3 = vmul.f32 %v2491_v45, %v1347_v22  ;;  %vm1340_vm12 = vcmp.eq.f32.partialorder %v1339_v55, 8.507059e+37 }
 0x2b5   : > { %1389 = vst.msk [vmem:[%s2090_s24 + $0x68] sm:$0xff] %vm815_vm5, %v1373_v20  ;;  %v1024_v21 = vsub.f32 1.5, %v1023_v49  ;;  %v1343_v41 = vsel %vm1340_vm12, %v1342_v27, %v1338_v26 }
 0x2b6   : > { %v1736_v13 = vpop.eup %1735  ;;  %v1349_v36 = vadd.f32 %v2491_v45, %v1348_v3 }
 0x2b7   : > { %v1025_v37 = vmul.f32 %v1732_v48, %v1024_v21  ;;  %v1031_v16 = vmul.f32 %v1736_v13, %v879_v32  ;;  %vm1037_vm14 = vweird.f32 %v1736_v13 }
 0x2b8   : > { %v1353_v39 = vsel %vm1352_vm0, %v2491_v45, %v1349_v36  ;;  %vm1038_vm2 = vmor %vm1036_vm1, %vm1037_vm14 }
 0x2b9   : > { %v1029_v31 = vsel %vm1028_vm11, %v1732_v48, %v1025_v37  ;;  %v1032_v35 = vmul.f32 %v1736_v13, %v1031_v16 }
 0x2ba   : > { %v1054_v33 = vmul.f32 %v1029_v31, %v2043_v1  ;;  %v1354_v1 = vand.u32 2147483647, %v2459_v28 }
 0x2bb   : > { %v1033_v54 = vmul.f32 0.5, %v1032_v35 }
 0x2bc   : > { %v1374_v7 = vsel %vm782_vm4, %v1054_v33, %v1343_v41  ;;  %vm1355_vm3 = vcmp.eq.f32.partialorder %v1354_v1, 8.507059e+37 }
 0x2bd   : > { %1390 = vst.msk [vmem:[%s2090_s24 + $0x70] sm:$0xff] %vm815_vm5, %v1374_v7  ;;  %v1034_v40 = vsub.f32 1.5, %v1033_v54  ;;  %v1358_v42 = vsel %vm1355_vm3, %v1357_v25, %v1353_v39 }
 0x2bf   : > { %v1035_v38 = vmul.f32 %v1736_v13, %v1034_v40 }
 0x2c1   : > { %v1039_v43 = vsel %vm1038_vm2, %v1736_v13, %v1035_v38 }
 0x2c2   : > { %v1055_v52 = vmul.f32 %v1039_v43, %v2054_v14 }
 0x2c4   : > { %v1375_v24 = vsel %vm782_vm4, %v1055_v52, %v1358_v42 }
 0x2c5   : > { %1391 = vst.msk [vmem:[%s2090_s24 + $0x78] sm:$0xff] %vm815_vm5, %v1375_v24 }
 0x2c6 PF: > { %s18_s27 = sadd.s32 1, %s1743_s27  }
 0x2c7   : > { %p15_p4 = scmp.ge.s32.totalorder %s18_s27, 4  }
 0x2c9   :  { %17 = sbr.rel (!%p15_p4) target bundleno = 1 (0x1), region = 82 }

</bundles_post_ra>
